<compile_context>
chip_gen: v7x
topology: tpu7x:2x2x1
jax: 0.10.0
libtpu: 0.0.40
codegen_flags: <defaults>
</compile_context>

<pallas_src>
import functools

import numpy as np
import jax
import jax.numpy as jnp
from jax.experimental import pallas as pl
from jax.experimental.pallas import tpu as pltpu

# ---- small-but-consistent hyperparameters (scaled down from the module) ----
N_EMBD = 128          # n_embd (multiple of 128 for lane-dense layout)
N_HEAD = 4            # n_head
HEAD_SIZE = N_EMBD // N_HEAD
BLOCK_SIZE = 16       # T (sequence length)
BATCH = 2
EPS = 1e-5


def _layernorm(v, g, b):
    mu = jnp.mean(v, axis=-1, keepdims=True)
    var = jnp.mean((v - mu) ** 2, axis=-1, keepdims=True)
    return (v - mu) * jax.lax.rsqrt(var + EPS) * g + b


def block_kernel(x_ref, packmask_ref, bias_ref,
                 ln1g_ref, ln1b_ref,
                 wqkv_ref, wp_ref, bp_ref,
                 ln2g_ref, ln2b_ref,
                 w1_ref, b1_ref, w2_ref, b2_ref,
                 o_ref, *, n_seq, n_head, bf16_act):
    R, C = x_ref.shape            # R = n_seq * T rows handled this grid step
    T = R // n_seq
    H = n_head

    x = x_ref[...]                                     # (R, C) f32

    # ---------------- self-attention branch ----------------
    xn = _layernorm(x, ln1g_ref[0], ln1b_ref[0])       # LN1, f32 elementwise

    # Fused QKV projection (Q columns pre-scaled by head_size**-0.5): one
    # (R,C)x(C,3C) bf16 MXU pass with f32 accumulation.
    qkv = jnp.dot(xn.astype(jnp.bfloat16), wqkv_ref[...],
                  preferred_element_type=jnp.float32)  # (R, 3C) f32
    q = qkv[:, :C].astype(jnp.bfloat16)                # (R, C)

    # Pack K and V block-diagonally over (sequence, head): packed row
    # (s*H + h)*T + t holds [k|v][s*T + t] restricted to head h's channel
    # slice.  The 0/1 indicator is hoisted to the host (packmask_ref), so the
    # in-kernel packing is a sublane tile/concat plus ONE multiply.
    pack = packmask_ref[...]                           # (n_seq*H*T, 2C) f32

    def expand_heads(a):                               # (R, 2C) -> (n_seq*H*T, 2C)
        blocks = [jnp.tile(a[s * T:(s + 1) * T, :], (H, 1)) for s in range(n_seq)]
        return blocks[0] if n_seq == 1 else jnp.concatenate(blocks, axis=0)

    kv_packed = expand_heads(qkv[:, C:]) * pack        # [K_packed | V_packed]

    # All heads' (and sequences') scores in one lane-dense, RHS-transposed
    # matmul: contract the channel dim of q and packed K -> no XLU transpose.
    scores = jax.lax.dot_general(
        q, kv_packed[:, :C].astype(jnp.bfloat16),
        dimension_numbers=(((1,), (1,)), ((), ())),
        preferred_element_type=jnp.float32)            # (R, n_seq*H*T) f32

    # Hoisted additive mask: 0 where attendable, -1e30 for causal-future or
    # cross-sequence entries (safe only because scores stay f32 here).
    scores = scores + bias_ref[...]

    # A shared row max is a valid softmax shift for every head; per-head
    # normalization comes from the indicator-matmul denominator below.  p is
    # kept f32 through that matmul so a head sitting far below the shared max
    # cannot underflow (bf16 would zero both numerator and denominator).
    scores = scores - jnp.max(scores, axis=-1, keepdims=True)
    p = jnp.exp(scores)                                # (R, n_seq*H*T) f32

    # One matmul yields both the unnormalized per-head output and the per-head
    # softmax denominator already broadcast into the (R, C) channel layout.
    vd = jnp.concatenate([kv_packed[:, C:], pack[:, :C]], axis=1)   # (HT, 2C)
    od = jnp.dot(p, vd, preferred_element_type=jnp.float32)         # (R, 2C)
    attn = od[:, :C] * pl.reciprocal(od[:, C:], approx=True)        # normalized

    sa = jnp.dot(attn.astype(jnp.bfloat16), wp_ref[...],
                 preferred_element_type=jnp.float32) + bp_ref[0]
    x1 = x + sa                                        # residual 1 (dropout=id)

    # ---------------- feed-forward branch ----------------
    xn2 = _layernorm(x1, ln2g_ref[0], ln2b_ref[0])
    h1 = jnp.dot(xn2.astype(jnp.bfloat16), w1_ref[...],
                 preferred_element_type=jnp.float32)   # (R, 4C)
    if bf16_act:
        # bf16-capable VPU (v6e/v7x): halve vreg footprint of the widest tile.
        h1 = jnp.maximum(h1.astype(jnp.bfloat16) + b1_ref[0].astype(jnp.bfloat16),
                         jnp.bfloat16(0))
    else:
        # v5e VPU has no bf16: keep elementwise math f32.
        h1 = jnp.maximum(h1 + b1_ref[0], 0.0).astype(jnp.bfloat16)
    ff = jnp.dot(h1, w2_ref[...],
                 preferred_element_type=jnp.float32) + b2_ref[0]

    o_ref[...] = x1 + ff                               # residual 2 (dropout=id)


def _device_kind():
    try:
        return jax.devices()[0].device_kind.lower()
    except Exception:
        return ""


def _seqs_per_step(batch):
    """v7x (2 TensorCores/chip): keep >=2 parallel grid steps.  Single-TC
    chips (v5e/v6e): fold the whole batch into one grid step."""
    kind = _device_kind()
    if ("v7" in kind or "7x" in kind) and batch % 2 == 0 and batch >= 2:
        return batch // 2
    return batch


def _bf16_elementwise_ok():
    kind = _device_kind()
    return any(tag in kind for tag in ("v6", "v7", "7x"))


@functools.lru_cache(maxsize=None)
def _build_masks(n_seq, T, H, D, C):
    """Host-side, shape-constant masks (hoisted out of the kernel).

    pack_mask (n_seq*H*T, 2C): 0/1 block-diagonal head indicator, duplicated
      for the K and V halves of the packed slab; its first C columns are also
      the softmax-denominator indicator.
    bias (n_seq*T, n_seq*H*T): additive mask, 0 where attendable, -1e30 for
      causal-future or cross-sequence entries.
    """
    HT = n_seq * H * T
    R = n_seq * T
    rows = np.arange(HT)
    row_head = (rows // T) % H
    col_head = np.arange(C) // D
    ind = (row_head[:, None] == col_head[None, :]).astype(np.float32)   # (HT, C)
    pack_mask = np.concatenate([ind, ind], axis=1)                      # (HT, 2C)

    q_seq = np.arange(R) // T
    q_t = np.arange(R) % T
    k_seq = rows // (H * T)
    k_t = rows % T
    allowed = (q_seq[:, None] == k_seq[None, :]) & (q_t[:, None] >= k_t[None, :])
    bias = np.where(allowed, 0.0, -1e30).astype(np.float32)             # (R, HT)
    return jnp.asarray(pack_mask), jnp.asarray(bias)


def transformer_block(x, params, *, n_head=N_HEAD):
    B, T, C = x.shape
    D = C // n_head
    H4 = 4 * C

    n_seq = _seqs_per_step(B)
    assert B % n_seq == 0
    grid_steps = B // n_seq
    R = n_seq * T
    HT = n_seq * n_head * T

    pack_mask, attn_bias = _build_masks(n_seq, T, n_head, D, C)
    x2d = x.reshape(B * T, C)            # lane-dense (rows, C) layout

    def wspec(shape):
        # Grid-invariant block (constant index_map): fetched once, reused.
        return pl.BlockSpec(shape, lambda g, _s=len(shape): (0,) * _s)

    kernel = functools.partial(block_kernel, n_seq=n_seq, n_head=n_head,
                               bf16_act=_bf16_elementwise_ok())

    out2d = pl.pallas_call(
        kernel,
        out_shape=jax.ShapeDtypeStruct((B * T, C), jnp.float32),
        grid_spec=pltpu.PrefetchScalarGridSpec(
            num_scalar_prefetch=0,
            grid=(grid_steps,),
            in_specs=[
                pl.BlockSpec((R, C), lambda g: (g, 0)),      # x rows
                wspec((HT, 2 * C)),                          # packing indicator
                wspec((R, HT)),                              # causal/seq bias
                wspec((1, C)), wspec((1, C)),                # ln1 gamma/beta
                wspec((C, 3 * C)),                           # fused Wqkv (bf16)
                wspec((C, C)), wspec((1, C)),                # Wproj (bf16), bproj
                wspec((1, C)), wspec((1, C)),                # ln2 gamma/beta
                wspec((C, H4)), wspec((1, H4)),              # W1 (bf16), b1
                wspec((H4, C)), wspec((1, C)),               # W2 (bf16), b2
            ],
            out_specs=pl.BlockSpec((R, C), lambda g: (g, 0)),
        ),
        compiler_params=pltpu.CompilerParams(
            dimension_semantics=("parallel",)),
    )(x2d, pack_mask, attn_bias,
      params["ln1_g"], params["ln1_b"],
      params["wqkv"],
      params["wp"], params["bp"],
      params["ln2_g"], params["ln2_b"],
      params["w1"], params["b1"],
      params["w2"], params["b2"])
    return out2d.reshape(B, T, C)


# ---------------- pure-JAX f32 reference (same math, for verification) ----------------
def reference_block(x, p):
    def ln(v, g, b):
        mu = jnp.mean(v, axis=-1, keepdims=True)
        var = jnp.mean((v - mu) ** 2, axis=-1, keepdims=True)
        return (v - mu) / jnp.sqrt(var + EPS) * g[0] + b[0]

    B, T, C = x.shape
    xn = ln(x, p["ln1_g"], p["ln1_b"])
    qkv = xn @ p["wqkv"]
    q, k, v = qkv[..., :C], qkv[..., C:2 * C], qkv[..., 2 * C:]
    qh = q.reshape(B, T, N_HEAD, HEAD_SIZE).transpose(0, 2, 1, 3)
    kh = k.reshape(B, T, N_HEAD, HEAD_SIZE).transpose(0, 2, 1, 3)
    vh = v.reshape(B, T, N_HEAD, HEAD_SIZE).transpose(0, 2, 1, 3)
    wei = jnp.einsum("bhqd,bhkd->bhqk", qh, kh) * HEAD_SIZE ** (-0.5)
    mask = jnp.tril(jnp.ones((T, T), dtype=bool))
    wei = jnp.where(mask, wei, -jnp.inf)
    wei = jax.nn.softmax(wei, axis=-1)
    attn = jnp.einsum("bhqk,bhkd->bhqd", wei, vh).transpose(0, 2, 1, 3).reshape(B, T, C)
    x1 = x + attn @ p["wp"] + p["bp"][0]
    xn2 = ln(x1, p["ln2_g"], p["ln2_b"])
    ff = jnp.maximum(xn2 @ p["w1"] + p["b1"][0], 0.0) @ p["w2"] + p["b2"][0]
    return x1 + ff


def init_params(key, C):
    ks = jax.random.split(key, 8)
    s = 0.05
    H4 = 4 * C
    return {
        "ln1_g": jnp.ones((1, C), jnp.float32),
        "ln1_b": jnp.zeros((1, C), jnp.float32),
        # stored pre-transposed so y = x @ W (torch Linear does x @ W.T);
        # q/k/v fused along the output dimension.
        "wqkv": s * jax.random.normal(ks[0], (C, 3 * C), jnp.float32),
        "wp": s * jax.random.normal(ks[1], (C, C), jnp.float32),
        "bp": s * jax.random.normal(ks[2], (1, C), jnp.float32),
        "ln2_g": jnp.ones((1, C), jnp.float32),
        "ln2_b": jnp.zeros((1, C), jnp.float32),
        "w1": s * jax.random.normal(ks[3], (C, H4), jnp.float32),
        "b1": s * jax.random.normal(ks[4], (1, H4), jnp.float32),
        "w2": s * jax.random.normal(ks[5], (H4, C), jnp.float32),
        "b2": s * jax.random.normal(ks[6], (1, C), jnp.float32),
    }


def to_kernel_params(p, head_size):
    """One-time parameter transform: bf16 matmul weights (halves HBM->VMEM
    DMA) and the 1/sqrt(head_size) score scale folded into the Q columns of
    the fused QKV weight.  LN/bias params stay f32."""
    kp = dict(p)
    C = p["wqkv"].shape[0]
    scale = jnp.concatenate([
        jnp.full((C,), head_size ** -0.5, jnp.float32),
        jnp.ones((2 * C,), jnp.float32)])
    kp["wqkv"] = (p["wqkv"] * scale[None, :]).astype(jnp.bfloat16)
    for name in ("wp", "w1", "w2"):
        kp[name] = p[name].astype(jnp.bfloat16)
    return kp


if __name__ == "__main__":
    key = jax.random.PRNGKey(0)
    kx, kp = jax.random.split(key)
    x = jax.random.normal(kx, (BATCH, BLOCK_SIZE, N_EMBD), jnp.float32)
    params = init_params(kp, N_EMBD)
    kernel_params = to_kernel_params(params, HEAD_SIZE)

    out = jax.block_until_ready(transformer_block(x, kernel_params))
    ref = reference_block(x, params)

    assert out.shape == (BATCH, BLOCK_SIZE, N_EMBD)
    max_err = float(jnp.max(jnp.abs(out - ref)))
    # bf16 matmul operands + approx reciprocal vs f32 reference -> loose tol
    assert jnp.allclose(out, ref, atol=2e-2, rtol=2e-2), (
        f"mismatch vs reference, max abs err = {max_err}")

    print("KERNEL_OK")
</pallas_src>

<mosaic_0001>
module attributes {stable_mosaic.version = 11 : i64} {
  func.func @block_kernel(%arg0: i32, %arg1: memref<32x128xf32, #tpu.memory_space<vmem>>, %arg2: memref<128x256xf32, #tpu.memory_space<vmem>>, %arg3: memref<32x128xf32, #tpu.memory_space<vmem>>, %arg4: memref<1x128xf32, #tpu.memory_space<vmem>>, %arg5: memref<1x128xf32, #tpu.memory_space<vmem>>, %arg6: memref<128x384xbf16, #tpu.memory_space<vmem>>, %arg7: memref<128x128xbf16, #tpu.memory_space<vmem>>, %arg8: memref<1x128xf32, #tpu.memory_space<vmem>>, %arg9: memref<1x128xf32, #tpu.memory_space<vmem>>, %arg10: memref<1x128xf32, #tpu.memory_space<vmem>>, %arg11: memref<128x512xbf16, #tpu.memory_space<vmem>>, %arg12: memref<1x512xf32, #tpu.memory_space<vmem>>, %arg13: memref<512x128xbf16, #tpu.memory_space<vmem>>, %arg14: memref<1x128xf32, #tpu.memory_space<vmem>>, %arg15: memref<32x128xf32, #tpu.memory_space<vmem>>) attributes {dimension_semantics = [#tpu.dimension_semantics<parallel>], iteration_bounds = array<i64: 1>, scalar_prefetch = 0 : i64, scratch_operands = 0 : i64, tpu.core_type = #tpu.core_type<tc>, window_params = [{transform_indices = @transform_0, window_bounds = array<i64: 32, 128>}, {pipeline_mode = #tpu.pipeline_mode<synchronous>, transform_indices = @transform_1, window_bounds = array<i64: 128, 256>}, {pipeline_mode = #tpu.pipeline_mode<synchronous>, transform_indices = @transform_2, window_bounds = array<i64: 32, 128>}, {pipeline_mode = #tpu.pipeline_mode<synchronous>, transform_indices = @transform_3, window_bounds = array<i64: 1, 128>}, {pipeline_mode = #tpu.pipeline_mode<synchronous>, transform_indices = @transform_4, window_bounds = array<i64: 1, 128>}, {pipeline_mode = #tpu.pipeline_mode<synchronous>, transform_indices = @transform_5, window_bounds = array<i64: 128, 384>}, {pipeline_mode = #tpu.pipeline_mode<synchronous>, transform_indices = @transform_6, window_bounds = array<i64: 128, 128>}, {pipeline_mode = #tpu.pipeline_mode<synchronous>, transform_indices = @transform_7, window_bounds = array<i64: 1, 128>}, {pipeline_mode = #tpu.pipeline_mode<synchronous>, transform_indices = @transform_8, window_bounds = array<i64: 1, 128>}, {pipeline_mode = #tpu.pipeline_mode<synchronous>, transform_indices = @transform_9, window_bounds = array<i64: 1, 128>}, {pipeline_mode = #tpu.pipeline_mode<synchronous>, transform_indices = @transform_10, window_bounds = array<i64: 128, 512>}, {pipeline_mode = #tpu.pipeline_mode<synchronous>, transform_indices = @transform_11, window_bounds = array<i64: 1, 512>}, {pipeline_mode = #tpu.pipeline_mode<synchronous>, transform_indices = @transform_12, window_bounds = array<i64: 512, 128>}, {pipeline_mode = #tpu.pipeline_mode<synchronous>, transform_indices = @transform_13, window_bounds = array<i64: 1, 128>}, {transform_indices = @transform_14, window_bounds = array<i64: 32, 128>}]} {
    %c0 = arith.constant 0 : index
    %c0_0 = arith.constant 0 : index
    %0 = vector.load %arg1[%c0, %c0_0] : memref<32x128xf32, #tpu.memory_space<vmem>>, vector<32x128xf32>
    %c0_1 = arith.constant 0 : index
    %c0_2 = arith.constant 0 : index
    %1 = vector.load %arg4[%c0_1, %c0_2] : memref<1x128xf32, #tpu.memory_space<vmem>>, vector<1x128xf32>
    %2 = vector.shape_cast %1 : vector<1x128xf32> to vector<128xf32>
    %c0_3 = arith.constant 0 : index
    %c0_4 = arith.constant 0 : index
    %3 = vector.load %arg5[%c0_3, %c0_4] : memref<1x128xf32, #tpu.memory_space<vmem>>, vector<1x128xf32>
    %4 = vector.shape_cast %3 : vector<1x128xf32> to vector<128xf32>
    %cst = arith.constant dense<0.000000e+00> : vector<32xf32>
    %5 = vector.multi_reduction <add>, %0, %cst [1] : vector<32x128xf32> to vector<32xf32>
    %6 = vector.shape_cast %5 : vector<32xf32> to vector<32x1xf32>
    %cst_5 = arith.constant 1.280000e+02 : f32
    %7 = vector.broadcast %cst_5 : f32 to vector<32x1xf32>
    %8 = arith.divf %6, %7 : vector<32x1xf32>
    %9 = vector.broadcast %8 : vector<32x1xf32> to vector<32x128xf32>
    %10 = arith.subf %0, %9 : vector<32x128xf32>
    %11 = arith.mulf %10, %10 : vector<32x128xf32>
    %cst_6 = arith.constant dense<0.000000e+00> : vector<32xf32>
    %12 = vector.multi_reduction <add>, %11, %cst_6 [1] : vector<32x128xf32> to vector<32xf32>
    %13 = vector.shape_cast %12 : vector<32xf32> to vector<32x1xf32>
    %cst_7 = arith.constant 1.280000e+02 : f32
    %14 = vector.broadcast %cst_7 : f32 to vector<32x1xf32>
    %15 = arith.divf %13, %14 : vector<32x1xf32>
    %16 = vector.broadcast %8 : vector<32x1xf32> to vector<32x128xf32>
    %17 = arith.subf %0, %16 : vector<32x128xf32>
    %cst_8 = arith.constant 9.99999974E-6 : f32
    %18 = vector.broadcast %cst_8 : f32 to vector<32x1xf32>
    %19 = arith.addf %15, %18 : vector<32x1xf32>
    %20 = math.rsqrt %19 : vector<32x1xf32>
    %21 = vector.broadcast %20 : vector<32x1xf32> to vector<32x128xf32>
    %22 = arith.mulf %17, %21 : vector<32x128xf32>
    %23 = vector.shape_cast %2 : vector<128xf32> to vector<1x128xf32>
    %24 = vector.broadcast %23 : vector<1x128xf32> to vector<32x128xf32>
    %25 = arith.mulf %22, %24 : vector<32x128xf32>
    %26 = vector.shape_cast %4 : vector<128xf32> to vector<1x128xf32>
    %27 = vector.broadcast %26 : vector<1x128xf32> to vector<32x128xf32>
    %28 = arith.addf %25, %27 : vector<32x128xf32>
    %29 = arith.truncf %28 : vector<32x128xf32> to vector<32x128xbf16>
    %c0_9 = arith.constant 0 : index
    %c0_10 = arith.constant 0 : index
    %30 = vector.load %arg6[%c0_9, %c0_10] : memref<128x384xbf16, #tpu.memory_space<vmem>>, vector<128x384xbf16>
    %cst_11 = arith.constant dense<0.000000e+00> : vector<32x384xf32>
    %31 = tpu.matmul %29, %30, %cst_11 {dimension_numbers = #tpu.dot_dimension_numbers<[1], [0], [0], [1], [0, 0, 1, 1], [], []>} : vector<32x128xbf16>, vector<128x384xbf16>, vector<32x384xf32> -> vector<32x384xf32>
    %32 = vector.extract_strided_slice %31 {offsets = [0, 0], sizes = [32, 128], strides = [1, 1]} : vector<32x384xf32> to vector<32x128xf32>
    %33 = arith.truncf %32 : vector<32x128xf32> to vector<32x128xbf16>
    %c0_12 = arith.constant 0 : index
    %c0_13 = arith.constant 0 : index
    %34 = vector.load %arg2[%c0_12, %c0_13] : memref<128x256xf32, #tpu.memory_space<vmem>>, vector<128x256xf32>
    %35 = vector.extract_strided_slice %31 {offsets = [0, 128], sizes = [32, 256], strides = [1, 1]} : vector<32x384xf32> to vector<32x256xf32>
    %36 = vector.extract_strided_slice %35 {offsets = [0, 0], sizes = [16, 256], strides = [1, 1]} : vector<32x256xf32> to vector<16x256xf32>
    %37 = tpu.concatenate %36, %36, %36, %36 in 0 : vector<16x256xf32>, vector<16x256xf32>, vector<16x256xf32>, vector<16x256xf32> -> vector<64x256xf32>
    %38 = vector.extract_strided_slice %35 {offsets = [16, 0], sizes = [16, 256], strides = [1, 1]} : vector<32x256xf32> to vector<16x256xf32>
    %39 = tpu.concatenate %38, %38, %38, %38 in 0 : vector<16x256xf32>, vector<16x256xf32>, vector<16x256xf32>, vector<16x256xf32> -> vector<64x256xf32>
    %40 = tpu.concatenate %37, %39 in 0 : vector<64x256xf32>, vector<64x256xf32> -> vector<128x256xf32>
    %41 = arith.mulf %40, %34 : vector<128x256xf32>
    %42 = vector.extract_strided_slice %41 {offsets = [0, 0], sizes = [128, 128], strides = [1, 1]} : vector<128x256xf32> to vector<128x128xf32>
    %43 = arith.truncf %42 : vector<128x128xf32> to vector<128x128xbf16>
    %cst_14 = arith.constant dense<0.000000e+00> : vector<32x128xf32>
    %44 = tpu.matmul %33, %43, %cst_14 {dimension_numbers = #tpu.dot_dimension_numbers<[1], [1], [0], [0], [0, 0, 1, 0], [], []>} : vector<32x128xbf16>, vector<128x128xbf16>, vector<32x128xf32> -> vector<32x128xf32>
    %c0_15 = arith.constant 0 : index
    %c0_16 = arith.constant 0 : index
    %45 = vector.load %arg3[%c0_15, %c0_16] : memref<32x128xf32, #tpu.memory_space<vmem>>, vector<32x128xf32>
    %46 = arith.addf %44, %45 : vector<32x128xf32>
    %cst_17 = arith.constant dense<0xFF800000> : vector<32xf32>
    %47 = vector.multi_reduction <maximumf>, %46, %cst_17 [1] : vector<32x128xf32> to vector<32xf32>
    %48 = vector.shape_cast %47 : vector<32xf32> to vector<32x1xf32>
    %49 = vector.broadcast %48 : vector<32x1xf32> to vector<32x128xf32>
    %50 = arith.subf %46, %49 : vector<32x128xf32>
    %51 = math.exp %50 : vector<32x128xf32>
    %52 = vector.extract_strided_slice %41 {offsets = [0, 128], sizes = [128, 128], strides = [1, 1]} : vector<128x256xf32> to vector<128x128xf32>
    %53 = vector.extract_strided_slice %34 {offsets = [0, 0], sizes = [128, 128], strides = [1, 1]} : vector<128x256xf32> to vector<128x128xf32>
    %54 = tpu.concatenate %52, %53 in 1 : vector<128x128xf32>, vector<128x128xf32> -> vector<128x256xf32>
    %cst_18 = arith.constant dense<0.000000e+00> : vector<32x256xf32>
    %55 = tpu.matmul %51, %54, %cst_18 {dimension_numbers = #tpu.dot_dimension_numbers<[1], [0], [0], [1], [0, 0, 1, 1], [], []>} : vector<32x128xf32>, vector<128x256xf32>, vector<32x256xf32> -> vector<32x256xf32>
    %56 = vector.extract_strided_slice %55 {offsets = [0, 0], sizes = [32, 128], strides = [1, 1]} : vector<32x256xf32> to vector<32x128xf32>
    %57 = vector.extract_strided_slice %55 {offsets = [0, 128], sizes = [32, 128], strides = [1, 1]} : vector<32x256xf32> to vector<32x128xf32>
    %58 = tpu.reciprocal %57 {approx = true} : vector<32x128xf32> -> vector<32x128xf32>
    %59 = arith.mulf %56, %58 : vector<32x128xf32>
    %60 = arith.truncf %59 : vector<32x128xf32> to vector<32x128xbf16>
    %c0_19 = arith.constant 0 : index
    %c0_20 = arith.constant 0 : index
    %61 = vector.load %arg7[%c0_19, %c0_20] : memref<128x128xbf16, #tpu.memory_space<vmem>>, vector<128x128xbf16>
    %cst_21 = arith.constant dense<0.000000e+00> : vector<32x128xf32>
    %62 = tpu.matmul %60, %61, %cst_21 {dimension_numbers = #tpu.dot_dimension_numbers<[1], [0], [0], [1], [0, 0, 1, 1], [], []>} : vector<32x128xbf16>, vector<128x128xbf16>, vector<32x128xf32> -> vector<32x128xf32>
    %c0_22 = arith.constant 0 : index
    %c0_23 = arith.constant 0 : index
    %63 = vector.load %arg8[%c0_22, %c0_23] : memref<1x128xf32, #tpu.memory_space<vmem>>, vector<1x128xf32>
    %64 = vector.shape_cast %63 : vector<1x128xf32> to vector<128xf32>
    %65 = vector.shape_cast %64 : vector<128xf32> to vector<1x128xf32>
    %66 = vector.broadcast %65 : vector<1x128xf32> to vector<32x128xf32>
    %67 = arith.addf %62, %66 : vector<32x128xf32>
    %68 = arith.addf %0, %67 : vector<32x128xf32>
    %c0_24 = arith.constant 0 : index
    %c0_25 = arith.constant 0 : index
    %69 = vector.load %arg9[%c0_24, %c0_25] : memref<1x128xf32, #tpu.memory_space<vmem>>, vector<1x128xf32>
    %70 = vector.shape_cast %69 : vector<1x128xf32> to vector<128xf32>
    %c0_26 = arith.constant 0 : index
    %c0_27 = arith.constant 0 : index
    %71 = vector.load %arg10[%c0_26, %c0_27] : memref<1x128xf32, #tpu.memory_space<vmem>>, vector<1x128xf32>
    %72 = vector.shape_cast %71 : vector<1x128xf32> to vector<128xf32>
    %cst_28 = arith.constant dense<0.000000e+00> : vector<32xf32>
    %73 = vector.multi_reduction <add>, %68, %cst_28 [1] : vector<32x128xf32> to vector<32xf32>
    %74 = vector.shape_cast %73 : vector<32xf32> to vector<32x1xf32>
    %cst_29 = arith.constant 1.280000e+02 : f32
    %75 = vector.broadcast %cst_29 : f32 to vector<32x1xf32>
    %76 = arith.divf %74, %75 : vector<32x1xf32>
    %77 = vector.broadcast %76 : vector<32x1xf32> to vector<32x128xf32>
    %78 = arith.subf %68, %77 : vector<32x128xf32>
    %79 = arith.mulf %78, %78 : vector<32x128xf32>
    %cst_30 = arith.constant dense<0.000000e+00> : vector<32xf32>
    %80 = vector.multi_reduction <add>, %79, %cst_30 [1] : vector<32x128xf32> to vector<32xf32>
    %81 = vector.shape_cast %80 : vector<32xf32> to vector<32x1xf32>
    %cst_31 = arith.constant 1.280000e+02 : f32
    %82 = vector.broadcast %cst_31 : f32 to vector<32x1xf32>
    %83 = arith.divf %81, %82 : vector<32x1xf32>
    %84 = vector.broadcast %76 : vector<32x1xf32> to vector<32x128xf32>
    %85 = arith.subf %68, %84 : vector<32x128xf32>
    %cst_32 = arith.constant 9.99999974E-6 : f32
    %86 = vector.broadcast %cst_32 : f32 to vector<32x1xf32>
    %87 = arith.addf %83, %86 : vector<32x1xf32>
    %88 = math.rsqrt %87 : vector<32x1xf32>
    %89 = vector.broadcast %88 : vector<32x1xf32> to vector<32x128xf32>
    %90 = arith.mulf %85, %89 : vector<32x128xf32>
    %91 = vector.shape_cast %70 : vector<128xf32> to vector<1x128xf32>
    %92 = vector.broadcast %91 : vector<1x128xf32> to vector<32x128xf32>
    %93 = arith.mulf %90, %92 : vector<32x128xf32>
    %94 = vector.shape_cast %72 : vector<128xf32> to vector<1x128xf32>
    %95 = vector.broadcast %94 : vector<1x128xf32> to vector<32x128xf32>
    %96 = arith.addf %93, %95 : vector<32x128xf32>
    %97 = arith.truncf %96 : vector<32x128xf32> to vector<32x128xbf16>
    %c0_33 = arith.constant 0 : index
    %c0_34 = arith.constant 0 : index
    %98 = vector.load %arg11[%c0_33, %c0_34] : memref<128x512xbf16, #tpu.memory_space<vmem>>, vector<128x512xbf16>
    %cst_35 = arith.constant dense<0.000000e+00> : vector<32x512xf32>
    %99 = tpu.matmul %97, %98, %cst_35 {dimension_numbers = #tpu.dot_dimension_numbers<[1], [0], [0], [1], [0, 0, 1, 1], [], []>} : vector<32x128xbf16>, vector<128x512xbf16>, vector<32x512xf32> -> vector<32x512xf32>
    %c0_36 = arith.constant 0 : index
    %c0_37 = arith.constant 0 : index
    %100 = vector.load %arg12[%c0_36, %c0_37] : memref<1x512xf32, #tpu.memory_space<vmem>>, vector<1x512xf32>
    %101 = vector.shape_cast %100 : vector<1x512xf32> to vector<512xf32>
    %102 = vector.shape_cast %101 : vector<512xf32> to vector<1x512xf32>
    %103 = vector.broadcast %102 : vector<1x512xf32> to vector<32x512xf32>
    %104 = arith.addf %99, %103 : vector<32x512xf32>
    %cst_38 = arith.constant 0.000000e+00 : f32
    %105 = vector.broadcast %cst_38 : f32 to vector<32x512xf32>
    %106 = arith.maximumf %104, %105 : vector<32x512xf32>
    %107 = arith.truncf %106 : vector<32x512xf32> to vector<32x512xbf16>
    %c0_39 = arith.constant 0 : index
    %c0_40 = arith.constant 0 : index
    %108 = vector.load %arg13[%c0_39, %c0_40] : memref<512x128xbf16, #tpu.memory_space<vmem>>, vector<512x128xbf16>
    %cst_41 = arith.constant dense<0.000000e+00> : vector<32x128xf32>
    %109 = tpu.matmul %107, %108, %cst_41 {dimension_numbers = #tpu.dot_dimension_numbers<[1], [0], [0], [1], [0, 0, 1, 1], [], []>} : vector<32x512xbf16>, vector<512x128xbf16>, vector<32x128xf32> -> vector<32x128xf32>
    %c0_42 = arith.constant 0 : index
    %c0_43 = arith.constant 0 : index
    %110 = vector.load %arg14[%c0_42, %c0_43] : memref<1x128xf32, #tpu.memory_space<vmem>>, vector<1x128xf32>
    %111 = vector.shape_cast %110 : vector<1x128xf32> to vector<128xf32>
    %112 = vector.shape_cast %111 : vector<128xf32> to vector<1x128xf32>
    %113 = vector.broadcast %112 : vector<1x128xf32> to vector<32x128xf32>
    %114 = arith.addf %109, %113 : vector<32x128xf32>
    %115 = arith.addf %68, %114 : vector<32x128xf32>
    %c0_44 = arith.constant 0 : index
    %c0_45 = arith.constant 0 : index
    %116 = vector.load %arg15[%c0_44, %c0_45] : memref<32x128xf32, #tpu.memory_space<vmem>>, vector<32x128xf32>
    tpu.vector_store %arg15[%c0_44, %c0_45], %115 {strides = array<i32>} : memref<32x128xf32, #tpu.memory_space<vmem>>, vector<32x128xf32>,
    return
  }
  func.func @transform_0(%arg0: i32) -> (i32, i32) {
    %c0_i32 = arith.constant 0 : i32
    %c0_i32_0 = arith.constant 0 : i32
    return %arg0, %c0_i32 : i32, i32
  }
  func.func @transform_1(%arg0: i32) -> (i32, i32) {
    %c0_i32 = arith.constant 0 : i32
    %c0_i32_0 = arith.constant 0 : i32
    %c0_i32_1 = arith.constant 0 : i32
    return %c0_i32, %c0_i32_0 : i32, i32
  }
  func.func @transform_2(%arg0: i32) -> (i32, i32) {
    %c0_i32 = arith.constant 0 : i32
    %c0_i32_0 = arith.constant 0 : i32
    %c0_i32_1 = arith.constant 0 : i32
    return %c0_i32, %c0_i32_0 : i32, i32
  }
  func.func @transform_3(%arg0: i32) -> (i32, i32) {
    %c0_i32 = arith.constant 0 : i32
    %c0_i32_0 = arith.constant 0 : i32
    %c0_i32_1 = arith.constant 0 : i32
    return %c0_i32, %c0_i32_0 : i32, i32
  }
  func.func @transform_4(%arg0: i32) -> (i32, i32) {
    %c0_i32 = arith.constant 0 : i32
    %c0_i32_0 = arith.constant 0 : i32
    %c0_i32_1 = arith.constant 0 : i32
    return %c0_i32, %c0_i32_0 : i32, i32
  }
  func.func @transform_5(%arg0: i32) -> (i32, i32) {
    %c0_i32 = arith.constant 0 : i32
    %c0_i32_0 = arith.constant 0 : i32
    %c0_i32_1 = arith.constant 0 : i32
    return %c0_i32, %c0_i32_0 : i32, i32
  }
  func.func @transform_6(%arg0: i32) -> (i32, i32) {
    %c0_i32 = arith.constant 0 : i32
    %c0_i32_0 = arith.constant 0 : i32
    %c0_i32_1 = arith.constant 0 : i32
    return %c0_i32, %c0_i32_0 : i32, i32
  }
  func.func @transform_7(%arg0: i32) -> (i32, i32) {
    %c0_i32 = arith.constant 0 : i32
    %c0_i32_0 = arith.constant 0 : i32
    %c0_i32_1 = arith.constant 0 : i32
    return %c0_i32, %c0_i32_0 : i32, i32
  }
  func.func @transform_8(%arg0: i32) -> (i32, i32) {
    %c0_i32 = arith.constant 0 : i32
    %c0_i32_0 = arith.constant 0 : i32
    %c0_i32_1 = arith.constant 0 : i32
    return %c0_i32, %c0_i32_0 : i32, i32
  }
  func.func @transform_9(%arg0: i32) -> (i32, i32) {
    %c0_i32 = arith.constant 0 : i32
    %c0_i32_0 = arith.constant 0 : i32
    %c0_i32_1 = arith.constant 0 : i32
    return %c0_i32, %c0_i32_0 : i32, i32
  }
  func.func @transform_10(%arg0: i32) -> (i32, i32) {
    %c0_i32 = arith.constant 0 : i32
    %c0_i32_0 = arith.constant 0 : i32
    %c0_i32_1 = arith.constant 0 : i32
    return %c0_i32, %c0_i32_0 : i32, i32
  }
  func.func @transform_11(%arg0: i32) -> (i32, i32) {
    %c0_i32 = arith.constant 0 : i32
    %c0_i32_0 = arith.constant 0 : i32
    %c0_i32_1 = arith.constant 0 : i32
    return %c0_i32, %c0_i32_0 : i32, i32
  }
  func.func @transform_12(%arg0: i32) -> (i32, i32) {
    %c0_i32 = arith.constant 0 : i32
    %c0_i32_0 = arith.constant 0 : i32
    %c0_i32_1 = arith.constant 0 : i32
    return %c0_i32, %c0_i32_0 : i32, i32
  }
  func.func @transform_13(%arg0: i32) -> (i32, i32) {
    %c0_i32 = arith.constant 0 : i32
    %c0_i32_0 = arith.constant 0 : i32
    %c0_i32_1 = arith.constant 0 : i32
    return %c0_i32, %c0_i32_0 : i32, i32
  }
  func.func @transform_14(%arg0: i32) -> (i32, i32) {
    %c0_i32 = arith.constant 0 : i32
    %c0_i32_0 = arith.constant 0 : i32
    return %arg0, %c0_i32 : i32, i32
  }
}

</mosaic_0001>

<bundles_post_ra>
// kernel: tpu_custom_call.1
= control target key start
LH: loop header
LB: loop body
LE: loop exit
PB: predicated region body
PF: predicated region fallthrough
CT: control target
= control target key end

     0   :  { %19 = vsyncpa [#allocation3], 0  ;;  %s2667_s0 = inlined_call_operand.hbm [shape: f32[32,128], index: 0, kind: input, shape index: {}]   ;;  %s2668_s1 = inlined_call_operand.hbm [shape: f32[128,256], index: 1, kind: input, shape index: {}]   ;;  %s2669_s2 = inlined_call_operand.hbm [shape: f32[32,128], index: 2, kind: input, shape index: {}]   ;;  %s2670_s3 = inlined_call_operand.vmem [shape: f32[1,128], index: 3, kind: input, shape index: {}]   ;;  %s2671_s4 = inlined_call_operand.vmem [shape: f32[1,128], index: 4, kind: input, shape index: {}]   ;;  %s2672_s5 = inlined_call_operand.hbm [shape: bf16[128,384], index: 5, kind: input, shape index: {}]   ;;  %s2673_s6 = inlined_call_operand.hbm [shape: bf16[128,128], index: 6, kind: input, shape index: {}]   ;;  %s2674_s7 = inlined_call_operand.vmem [shape: f32[1,128], index: 7, kind: input, shape index: {}]   ;;  %s2675_s8 = inlined_call_operand.vmem [shape: f32[1,128], index: 8, kind: input, shape index: {}]   ;;  %s2676_s9 = inlined_call_operand.vmem [shape: f32[1,128], index: 9, kind: input, shape index: {}]   ;;  %s2677_s10 = inlined_call_operand.hbm [shape: bf16[128,512], index: 10, kind: input, shape index: {}]   ;;  %s2678_s11 = inlined_call_operand.vmem [shape: f32[1,512], index: 11, kind: input, shape index: {}]   ;;  %s2679_s12 = inlined_call_operand.hbm [shape: bf16[512,128], index: 12, kind: input, shape index: {}]   ;;  %s2680_s13 = inlined_call_operand.vmem [shape: f32[1,128], index: 13, kind: input, shape index: {}]   ;;  %s2681_s14 = inlined_call_operand.hbm [shape: f32[32,128], index: 14, kind: output, shape index: {}]  }
   0x1   :  { %20 = vsyncpa [#allocation6], 0 }
   0x2   :  { %21 = vsyncpa [#allocation9], 0 }
   0x3   :  { %22 = vsyncpa [#allocation12], 0 }
   0x4   :  { %23 = vsyncpa [#allocation4], 0  ;;  %s2287_s29 = smov [#allocation5]   ;;  %s2101_s17 = scalar_lea.hbm %s2668_s1, 4096 }
   0x5   :  { %s41_s30 = sshll.u32 %s2287_s29, 4  ;;  %p2102_p0 = scmp.ne.s32.totalorder %s2668_s1, %s2101_s17  ;;  %s42_s30 = int_to_ptr.vmem [resolvable:$true] %s41_s30 }
   0x6   :  { %p2105_p1 = scmp.lt.u32.totalorder %s2101_s17, %s2668_s1 }
   0x8   :  { %p2107_p2 = pnand %p2105_p1, %p2102_p0 }
   0xa   :  { %2110 = shalt.err (!%p2107_p2)
}
   0xb   :  { %s2111_s22 = scalar_lea.vmem %s42_s30, 4096  ;;  %p2116_p4 = scmp.lt.s32.totalorder %s42_s30, %s42_s30 }
   0xc   :  { %p2112_p3 = scmp.ne.s32.totalorder %s42_s30, %s2111_s22  ;;  %p2117_p5 = scmp.lt.s32.totalorder %s2111_s22, %s2111_s22 }
   0xe   :  { %p2118_p6 = por %p2117_p5, %p2116_p4 }
  0x10   :  { %p2119_p7 = pnand %p2118_p6, %p2112_p3 }
  0x12   :  { %2122 = shalt.err (!%p2119_p7)
}
  0x13   :  { %s2682_s23 = smov 256   ;;  %s2289_s24 = smov 16  }
  0x14   :  { %47 = dma.hbm_to_vmem [thread:$0]  %s2668_s1, 4096, %s42_s30, [#allocation6], %s2682_s23, %s2682_s23, %s2289_s24  }
  0x15   :  { %s2290_s27 = smov [#allocation8]   ;;  %s2123_s16 = scalar_lea.hbm %s2672_s5, 3072 }
  0x16   :  { %s69_s28 = sshll.u32 %s2290_s27, 4  ;;  %p2124_p8 = scmp.ne.s32.totalorder %s2672_s5, %s2123_s16  ;;  %s70_s28 = int_to_ptr.vmem [resolvable:$true] %s69_s28 }
  0x17   :  { %p2127_p9 = scmp.lt.u32.totalorder %s2123_s16, %s2672_s5 }
  0x19   :  { %p2129_p10 = pnand %p2127_p9, %p2124_p8 }
  0x1b   :  { %2132 = shalt.err (!%p2129_p10)
}
  0x1c   :  { %s2133_s21 = scalar_lea.vmem %s70_s28, 3072  ;;  %p2138_p12 = scmp.lt.s32.totalorder %s70_s28, %s70_s28 }
  0x1d   :  { %p2134_p11 = scmp.ne.s32.totalorder %s70_s28, %s2133_s21  ;;  %p2139_p13 = scmp.lt.s32.totalorder %s2133_s21, %s2133_s21 }
  0x1f   :  { %p2140_p0 = por %p2139_p13, %p2138_p12 }
  0x21   :  { %p2141_p1 = pnand %p2140_p0, %p2134_p11 }
  0x23   :  { %2144 = shalt.err (!%p2141_p1)
}
  0x24   :  { %s2291_s1 = smov 192   ;;  %s2292_s30 = smov 12  }
  0x25   :  { %75 = dma.hbm_to_vmem [thread:$0]  %s2672_s5, 3072, %s70_s28, [#allocation9], %s2291_s1, %s2291_s1, %s2292_s30  }
  0x26   :  { %s2293_s26 = smov [#allocation11]   ;;  %s2294_s29 = smov [#allocation2]  }
  0x27   :  { %s99_s27 = sshll.u32 %s2293_s26, 4  ;;  %s29_s15 = sshll.u32 %s2294_s29, 4  ;;  %s100_s27 = int_to_ptr.vmem [resolvable:$true] %s99_s27  ;;  %s2407_s15 = int_to_ptr.vmem [resolvable:$true] %s29_s15 }
  0x28   :  { %s2145_s18 = scalar_lea.hbm %s2677_s10, 4096 }
  0x29   :  { %p2146_p2 = scmp.ne.s32.totalorder %s2677_s10, %s2145_s18  ;;  %p2149_p3 = scmp.lt.u32.totalorder %s2145_s18, %s2677_s10 }
  0x2b   :  { %p2151_p4 = pnand %p2149_p3, %p2146_p2 }
  0x2d   :  { %2154 = shalt.err (!%p2151_p4)
}
  0x2e   :  { %s2155_s5 = scalar_lea.vmem %s100_s27, 4096  ;;  %p2160_p6 = scmp.lt.s32.totalorder %s100_s27, %s100_s27 }
  0x2f   :  { %p2156_p5 = scmp.ne.s32.totalorder %s100_s27, %s2155_s5  ;;  %p2161_p7 = scmp.lt.s32.totalorder %s2155_s5, %s2155_s5 }
  0x31   :  { %p2162_p8 = por %p2161_p7, %p2160_p6 }
  0x33   :  { %p2163_p9 = pnand %p2162_p8, %p2156_p5 }
  0x35   :  { %2166 = shalt.err (!%p2163_p9)
}
  0x36   :  { %s2683_s28 = smov 256   ;;  %s2167_s23 = scalar_lea.hbm %s2667_s0, 512 }
  0x37   :  { %105 = dma.hbm_to_vmem [thread:$0]  %s2677_s10, 4096, %s100_s27, [#allocation12], %s2683_s28, %s2683_s28, %s2289_s24  }
  0x38   :  { %p2168_p10 = scmp.ne.s32.totalorder %s2667_s0, %s2167_s23  ;;  %p2171_p11 = scmp.lt.u32.totalorder %s2167_s23, %s2667_s0 }
  0x3a   :  { %p2173_p12 = pnand %p2171_p11, %p2168_p10 }
  0x3c   :  { %2176 = shalt.err (!%p2173_p12)
}
  0x3d   :  { %s2177_s18 = scalar_lea.vmem %s2407_s15, 512  ;;  %p2182_p0 = scmp.lt.s32.totalorder %s2407_s15, %s2407_s15 }
  0x3e   :  { %p2178_p13 = scmp.ne.s32.totalorder %s2407_s15, %s2177_s18  ;;  %p2183_p1 = scmp.lt.s32.totalorder %s2177_s18, %s2177_s18 }
  0x40   :  { %p2184_p2 = por %p2183_p1, %p2182_p0 }
  0x42   :  { %p2185_p3 = pnand %p2184_p2, %p2178_p13 }
  0x44   :  { %2188 = shalt.err (!%p2185_p3)
}
  0x45   :  { %s2295_s10 = smov 128   ;;  %s2296_s24 = smov 8  }
  0x46   :  { %35 = dma.hbm_to_vmem [thread:$0]  %s2667_s0, 512, %s2407_s15, [#allocation3], %s2295_s10, %s2295_s10, %s2296_s24  }
  0x47   :  { %s2297_s20 = smov [#allocation7]   ;;  %s2298_s5 = smov [#allocation10]  }
  0x48   :  { %s53_s21 = sshll.u32 %s2297_s20, 4  ;;  %s81_s28 = sshll.u32 %s2298_s5, 4  ;;  %s54_s21 = int_to_ptr.vmem [resolvable:$true] %s53_s21  ;;  %s2444_s28 = int_to_ptr.vmem [resolvable:$true] %s81_s28 }
  0x49   :  { %s2189_s22 = scalar_lea.hbm %s2669_s2, 512 }
  0x4a   :  { %p2190_p4 = scmp.ne.s32.totalorder %s2669_s2, %s2189_s22  ;;  %p2193_p5 = scmp.lt.u32.totalorder %s2189_s22, %s2669_s2 }
  0x4c   :  { %p2195_p6 = pnand %p2193_p5, %p2190_p4 }
  0x4e   :  { %2198 = shalt.err (!%p2195_p6)
}
  0x4f   :  { %s2199_s0 = scalar_lea.vmem %s54_s21, 512  ;;  %p2204_p8 = scmp.lt.s32.totalorder %s54_s21, %s54_s21 }
  0x50   :  { %p2200_p7 = scmp.ne.s32.totalorder %s54_s21, %s2199_s0  ;;  %p2205_p9 = scmp.lt.s32.totalorder %s2199_s0, %s2199_s0 }
  0x52   :  { %p2206_p10 = por %p2205_p9, %p2204_p8 }
  0x54   :  { %p2207_p11 = pnand %p2206_p10, %p2200_p7 }
  0x56   :  { %2210 = shalt.err (!%p2207_p11)
}
  0x57   :  { %59 = dma.hbm_to_vmem [thread:$0]  %s2669_s2, 512, %s54_s21, [#allocation6], %s2295_s10, %s2295_s10, %s2296_s24  }
  0x58   :  { %s2211_s27 = scalar_lea.hbm %s2673_s6, 1024 }
  0x59   :  { %p2212_p12 = scmp.ne.s32.totalorder %s2673_s6, %s2211_s27  ;;  %p2215_p13 = scmp.lt.u32.totalorder %s2211_s27, %s2673_s6 }
  0x5b   :  { %p2217_p0 = pnand %p2215_p13, %p2212_p12 }
  0x5d   :  { %2220 = shalt.err (!%p2217_p0)
}
  0x5e   :  { %s2221_s30 = scalar_lea.vmem %s2444_s28, 1024  ;;  %p2226_p2 = scmp.lt.s32.totalorder %s2444_s28, %s2444_s28 }
  0x5f   :  { %p2222_p1 = scmp.ne.s32.totalorder %s2444_s28, %s2221_s30  ;;  %p2227_p3 = scmp.lt.s32.totalorder %s2221_s30, %s2221_s30 }
  0x61   :  { %p2228_p4 = por %p2227_p3, %p2226_p2 }
  0x63   :  { %p2229_p5 = pnand %p2228_p4, %p2222_p1 }
  0x65   :  { %2232 = shalt.err (!%p2229_p5)
}
  0x66   :  { %s2299_s2 = smov 64   ;;  %s2300_s21 = smov 4  }
  0x67   :  { %87 = dma.hbm_to_vmem [thread:$0]  %s2673_s6, 1024, %s2444_s28, [#allocation9], %s2299_s2, %s2299_s2, %s2300_s21  }
  0x68   :  { %s2301_s23 = smov [#allocation13]   ;;  %s2233_s15 = scalar_lea.hbm %s2679_s12, 4096 }
  0x69   :  { %s113_s26 = sshll.u32 %s2301_s23, 4  ;;  %p2234_p6 = scmp.ne.s32.totalorder %s2679_s12, %s2233_s15  ;;  %s114_s26 = int_to_ptr.vmem [resolvable:$true] %s113_s26 }
  0x6a   :  { %p2237_p7 = scmp.lt.u32.totalorder %s2233_s15, %s2679_s12 }
  0x6c   :  { %p2239_p8 = pnand %p2237_p7, %p2234_p6 }
  0x6e   :  { %2242 = shalt.err (!%p2239_p8)
}
  0x6f   :  { %s2243_s19 = scalar_lea.vmem %s114_s26, 4096  ;;  %p2248_p10 = scmp.lt.s32.totalorder %s114_s26, %s114_s26 }
  0x70   :  { %p2244_p9 = scmp.ne.s32.totalorder %s114_s26, %s2243_s19  ;;  %p2249_p11 = scmp.lt.s32.totalorder %s2243_s19, %s2243_s19 }
  0x72   :  { %p2250_p12 = por %p2249_p11, %p2248_p10 }
  0x74   :  { %p2251_p13 = pnand %p2250_p12, %p2244_p9 }
  0x76   :  { %2254 = shalt.err (!%p2251_p13)
}
  0x77   :  { %119 = dma.hbm_to_vmem [thread:$0]  %s2679_s12, 4096, %s114_s26, [#allocation12], %s2299_s2, %s2299_s2, %s2300_s21  }
  0x78   :  { %2277 = dma.done.wait [#allocation3], 512  }
  0x79   :  { %2278 = vsyncadd [#allocation3], 4294966784 }
  0x7a   :  { %2279 = dma.done.wait [#allocation6], 4608  }
  0x7b   :  { %2280 = vsyncadd [#allocation6], 4294962688 }
  0x7c   :  { %2281 = dma.done.wait [#allocation9], 4096  }
  0x7d   :  { %2282 = vsyncadd [#allocation9], 4294963200 }
  0x7e   :  { %2283 = dma.done.wait [#allocation12], 8192  }
  0x7f   :  { %2284 = vsyncadd [#allocation12], 4294959104  ;;  %v2490_v0 = vld [vmem:[#allocation2] sm:$0xff]  ;;  %v146_v1 = vld [vmem:[#allocation2 + $0x10] sm:$0xff]  ;;  %v2302_v39 = vmov 0  }
  0x80   :  { %v2492_v2 = vld [vmem:[#allocation2 + $0x8] sm:$0xff]  ;;  %150 = vadd.xlane.f32.xlu0 %v2490_v0  ;;  %154 = vadd.xlane.f32.xlu1 %v146_v1  ;;  %v2495_v3 = vld [vmem:[#allocation2 + $0x18] sm:$0xff]  ;;  %v1948_v4 = vld [vmem:[#allocation8 + $0x4] ss:$12 sps:$4 sm:$0xff]  }
  0x81   :  { %v1950_v5 = vld [vmem:[#allocation8] ss:$12 sps:$4 sm:$0xff]   ;;  %v1951_v6 = vld [vmem:[#allocation8 + $0x1c] ss:$12 sps:$4 sm:$0xff]   ;;  %377 = vmatprep.subr.bf16.mxu0 %v1948_v4  ;;  %v1954_v24 = vld [vmem:[#allocation8 + $0x18] ss:$12 sps:$4 sm:$0xff]   ;;  %409 = vmatprep.mubr.bf16.mxu0 %v2302_v39 }
  0x82   :  { %v1953_v7 = vld [vmem:[#allocation8 + $0x8] ss:$12 sps:$4 sm:$0xff]   ;;  %378 = vmatpush1.bf16.msra.mxu0 %v1950_v5  ;;  %v1957_v26 = vld [vmem:[#allocation8 + $0x20] ss:$12 sps:$4 sm:$0xff]   ;;  %v1958_v27 = vld [vmem:[#allocation8 + $0x30] ss:$12 sps:$4 sm:$0xff]  }
  0x83   :  { %1838 = vmatprep.subr.bf16.mxu1 %v1953_v7  ;;  %379 = vmatprep.subr.bf16.mxu0 %v1951_v6  ;;  %v1955_v25 = vld [vmem:[#allocation8 + $0x34] ss:$12 sps:$4 sm:$0xff]   ;;  %v1959_v28 = vld [vmem:[#allocation8 + $0x4c] ss:$12 sps:$4 sm:$0xff]   ;;  %v1963_v31 = vld [vmem:[#allocation8 + $0x64] ss:$12 sps:$4 sm:$0xff]  }
  0x84   :  { %152 = vadd.xlane.f32.xlu0 %v2492_v2  ;;  %156 = vadd.xlane.f32.xlu1 %v2495_v3  ;;  %v1961_v29 = vld [vmem:[#allocation8 + $0x38] ss:$12 sps:$4 sm:$0xff]   ;;  %v1962_v30 = vld [vmem:[#allocation8 + $0x48] ss:$12 sps:$4 sm:$0xff]   ;;  %v1965_v32 = vld [vmem:[#allocation8 + $0x50] ss:$12 sps:$4 sm:$0xff]  }
  0x85   :  { %1839 = vmatpush3.bf16.msra.mxu1 %v1953_v7  ;;  %v1966_v33 = vld [vmem:[#allocation8 + $0x60] ss:$12 sps:$4 sm:$0xff]   ;;  %v1967_v34 = vld [vmem:[#allocation8 + $0x7c] ss:$12 sps:$4 sm:$0xff]   ;;  %v1970_v36 = vld [vmem:[#allocation8 + $0x78] ss:$12 sps:$4 sm:$0xff]  }
  0x86   :  { %380 = vmatpush1.bf16.msra.mxu0 %v1954_v24  ;;  %1840 = vmatprep.subr.bf16.mxu1 %v1957_v26  ;;  %v1969_v35 = vld [vmem:[#allocation8 + $0x68] ss:$12 sps:$4 sm:$0xff]   ;;  %v1973_v38 = vld [vmem:[#allocation8 + $0x80] ss:$12 sps:$4 sm:$0xff]   ;;  %v1974_v40 = vld [vmem:[#allocation8 + $0x90] ss:$12 sps:$4 sm:$0xff]  }
  0x87   :  { %381 = vmatprep.subr.bf16.mxu0 %v1955_v25  ;;  %v1971_v37 = vld [vmem:[#allocation8 + $0x94] ss:$12 sps:$4 sm:$0xff]   ;;  %v1975_v41 = vld [vmem:[#allocation8 + $0xac] ss:$12 sps:$4 sm:$0xff]   ;;  %v1979_v44 = vld [vmem:[#allocation8 + $0xb0] ss:$12 sps:$4 sm:$0xff]  }
  0x88   :  { %v1977_v42 = vld [vmem:[#allocation8 + $0x98] ss:$12 sps:$4 sm:$0xff]   ;;  %v1978_v43 = vld [vmem:[#allocation8 + $0xa8] ss:$12 sps:$4 sm:$0xff]   ;;  %v1650_v59 = vld [vmem:[%s2670_s3] ss:$0 sm:$0xff] }
  0x89   :  { %1841 = vmatpush3.bf16.msra.mxu1 %v1957_v26  ;;  %v498_v24 = vld [vmem:[#allocation5 + $0x88] sm:$0xff]  ;;  %v2538_v26 = vld [vmem:[#allocation5 + $0x60] sm:$0xff] }
  0x8a   :  { %382 = vmatpush1.bf16.msra.mxu0 %v1958_v27  ;;  %1842 = vmatprep.subr.bf16.mxu1 %v1961_v29  ;;  %v502_v25 = vld [vmem:[#allocation5 + $0xa8] sm:$0xff] }
  0x8b   :  { %383 = vmatprep.subr.bf16.mxu0 %v1959_v28  ;;  %v506_v28 = vld [vmem:[#allocation5 + $0xc8] sm:$0xff] }
  0x8d   :  { %1843 = vmatpush3.bf16.msra.mxu1 %v1961_v29  ;;  %v510_v29 = vld [vmem:[#allocation5 + $0xe8] sm:$0xff] }
  0x8e   :  { %384 = vmatpush1.bf16.msra.mxu0 %v1962_v30  ;;  %1844 = vmatprep.subr.bf16.mxu1 %v1965_v32  ;;  %v2540_v30 = vld [vmem:[#allocation5 + $0x70] sm:$0xff] }
  0x8f   :  { %385 = vmatprep.subr.bf16.mxu0 %v1963_v31 }
  0x91   :  { %1845 = vmatpush3.bf16.msra.mxu1 %v1965_v32 }
  0x92   :  { %386 = vmatpush1.bf16.msra.mxu0 %v1966_v33  ;;  %1846 = vmatprep.subr.bf16.mxu1 %v1969_v35  ;;  %v482_v33 = vld [vmem:[#allocation5 + $0x8] sm:$0xff] }
  0x93   :  { %387 = vmatprep.subr.bf16.mxu0 %v1967_v34  ;;  %v486_v34 = vld [vmem:[#allocation5 + $0x28] sm:$0xff] }
  0x95   :  { %1847 = vmatpush3.bf16.msra.mxu1 %v1969_v35  ;;  %v490_v35 = vld [vmem:[#allocation5 + $0x48] sm:$0xff] }
  0x96   :  { %388 = vmatpush1.bf16.msra.mxu0 %v1970_v36  ;;  %1848 = vmatprep.subr.bf16.mxu1 %v1973_v38 }
  0x97   :  { %389 = vmatprep.subr.bf16.mxu0 %v1971_v37 }
  0x99   :  { %1849 = vmatpush3.bf16.msra.mxu1 %v1973_v38 }
  0x9a   :  { %390 = vmatpush1.bf16.msra.mxu0 %v1974_v40  ;;  %1850 = vmatprep.subr.bf16.mxu1 %v1977_v42 }
  0x9b   :  { %391 = vmatprep.subr.bf16.mxu0 %v1975_v41 }
  0x9d   :  { %1851 = vmatpush3.bf16.msra.mxu1 %v1977_v42 }
  0x9e   :  { %392 = vmatpush1.bf16.msra.mxu0 %v1978_v43  ;;  %1852 = vmatprep.subr.bf16.mxu1 %v1979_v44  ;;  %v494_v43 = vld [vmem:[#allocation5 + $0x68] sm:$0xff] }
  0xa1   :  { %1853 = vmatpush3.bf16.msra.mxu1 %v1979_v44  ;;  %v500_v44 = vld [vmem:[#allocation5 + $0x98] sm:$0xff] }
 0x10d   :  { %v151_v8 = vpop.xlane.xlu0 %150  ;;  %v155_v9 = vpop.xlane.xlu1 %154 }
 0x10e   :  { %v159_v10 = vmul.f32 0.0078125, %v151_v8  ;;  %v161_v11 = vmul.f32 0.0078125, %v155_v9 }
 0x110   :  { %v2500_v12 = vsub.f32 %v2490_v0, %v159_v10  ;;  %v2502_v13 = vsub.f32 %v146_v1, %v161_v11  ;;  %v1651_v1 = vld [vmem:[%s2671_s4] ss:$0 sm:$0xff] }
 0x111   :  { %v153_v14 = vpop.xlane.xlu0 %152  ;;  %v157_v15 = vpop.xlane.xlu1 %156 }
 0x112   :  { %v160_v16 = vmul.f32 0.0078125, %v153_v14  ;;  %v167_v17 = vmul.f32 %v2500_v12, %v2500_v12  ;;  %v162_v18 = vmul.f32 0.0078125, %v157_v15  ;;  %v169_v21 = vmul.f32 %v2502_v13, %v2502_v13 }
 0x114   :  { %v2507_v19 = vsub.f32 %v2492_v2, %v160_v16  ;;  %171 = vadd.xlane.f32.xlu0 %v167_v17  ;;  %v2510_v20 = vsub.f32 %v2495_v3, %v162_v18  ;;  %v481_v17 = vld [vmem:[#allocation5] sm:$0xff] }
 0x116   :  { %v168_v22 = vmul.f32 %v2507_v19, %v2507_v19  ;;  %v170_v23 = vmul.f32 %v2510_v20, %v2510_v20 }
 0x118   :  { %175 = vadd.xlane.f32.xlu0 %v169_v21  ;;  %173 = vadd.xlane.f32.xlu1 %v168_v22  ;;  %v2532_v21 = vld [vmem:[#allocation5 + $0x40] sm:$0xff]  ;;  %v2536_v22 = vld [vmem:[#allocation5 + $0x50] sm:$0xff] }
 0x119   :  { %v1906_v37 = vpack.c.bf16 %v2536_v22, %v2532_v21 }
 0x11c   :  { %177 = vadd.xlane.f32.xlu1 %v170_v23 }
 0x1a1   :  { %v172_v45 = vpop.xlane.xlu0 %171 }
 0x1a2   :  { %v179_v46 = vmul.f32 0.0078125, %v172_v45  ;;  %v504_v45 = vld [vmem:[#allocation5 + $0xb8] sm:$0xff] }
 0x1a4   :  { %v183_v47 = vadd.f32 1e-05, %v179_v46 }
 0x1a5   :  { %v174_v48 = vpop.xlane.xlu1 %173  ;;  %v176_v49 = vpop.xlane.xlu0 %175 }
 0x1a6   :  { %2068 = vrsqrt.f32 %v183_v47  ;;  %v180_v50 = vmul.f32 0.0078125, %v174_v48  ;;  %v181_v51 = vmul.f32 0.0078125, %v176_v49 }
 0x1a8   :  { %v184_v52 = vadd.f32 1e-05, %v180_v50  ;;  %v185_v53 = vadd.f32 1e-05, %v181_v51  ;;  %v508_v51 = vld [vmem:[#allocation5 + $0xd8] sm:$0xff] }
 0x1a9   :  { %v178_v54 = vpop.xlane.xlu1 %177 }
 0x1aa   :  { %2070 = vrsqrt.f32 %v184_v52  ;;  %v182_v55 = vmul.f32 0.0078125, %v178_v54  ;;  %v512_v52 = vld [vmem:[#allocation5 + $0xf8] sm:$0xff] }
 0x1ab   :  { %2072 = vrsqrt.f32 %v185_v53  ;;  %v484_v53 = vld [vmem:[#allocation5 + $0x18] sm:$0xff] }
 0x1ac   :  { %v186_v56 = vadd.f32 1e-05, %v182_v55 }
 0x1ae   :  { %2074 = vrsqrt.f32 %v186_v56 }
 0x1b0   :  { %v2069_v57 = vpop.eup %2068 }
 0x1b1   :  { %v191_v58 = vmul.f32 %v2069_v57, %v2500_v12 }
 0x1b3   :  { %v201_v63 = vmul.f32 %v1650_v59, %v191_v58 }
 0x1b4   :  { %v2071_v60 = vpop.eup %2070 }
 0x1b5   :  { %v2073_v61 = vpop.eup %2072  ;;  %v192_v62 = vmul.f32 %v2071_v60, %v2507_v19  ;;  %v211_v7 = vadd.f32 %v1651_v1, %v201_v63  ;;  %v2530_v19 = vld [vmem:[#allocation5 + $0x20] sm:$0xff]  ;;  %v488_v60 = vld [vmem:[#allocation5 + $0x38] sm:$0xff] }
 0x1b6   :  { %v193_v4 = vmul.f32 %v2073_v61, %v2502_v13  ;;  %v483_v13 = vld [vmem:[#allocation5 + $0x10] sm:$0xff]  ;;  %v492_v61 = vld [vmem:[#allocation5 + $0x58] sm:$0xff] }
 0x1b7   :  { %v202_v5 = vmul.f32 %v1650_v59, %v192_v62  ;;  %v1898_v18 = vpack.c.bf16 %v483_v13, %v481_v17  ;;  %v496_v62 = vld [vmem:[#allocation5 + $0x78] sm:$0xff] }
 0x1b8   :  { %v2075_v6 = vpop.eup %2074  ;;  %v203_v10 = vmul.f32 %v1650_v59, %v193_v4 }
 0x1b9   :  { %v212_v8 = vadd.f32 %v1651_v1, %v202_v5  ;;  %v194_v9 = vmul.f32 %v2075_v6, %v2510_v20  ;;  %1899 = vmatprep.subr.bf16.mxu1 %v1898_v18  ;;  %v2534_v20 = vld [vmem:[#allocation5 + $0x30] sm:$0xff] }
 0x1ba   :  { %v213_v14 = vadd.f32 %v1651_v1, %v203_v10  ;;  %v1902_v36 = vpack.c.bf16 %v2534_v20, %v2530_v19 }
 0x1bb   :  { %v215_v11 = vpack.c.bf16 %v212_v8, %v211_v7  ;;  %v204_v12 = vmul.f32 %v1650_v59, %v194_v9 }
 0x1bd   :  { %410 = vmatmul.mubr.bf16.vlgmr.msra.gmra.mrb[0].mxu0 %v215_v11  ;;  %1854 = vmatprep.mubr.bf16.mxu1 %v215_v11  ;;  %v214_v15 = vadd.f32 %v1651_v1, %v204_v12 }
 0x1be   :  { %419 = vmatprep.mubr.bf16.mxu0 %v2302_v39 }
 0x1bf   :  { %v216_v16 = vpack.c.bf16 %v214_v15, %v213_v14 }
 0x1c1   :  { %1855 = vmatmul.mubr.bf16.vlgmr.msra.gmra.mrb[0].mxu1 %v216_v16 }
 0x1c5   :  { %420 = vmatmul.mubr.bf16.gmra.mrb[4].mxu0 %v216_v16 }
 0x290   :  { %v411_v23 = vpop.f32.mrb[0].mxu0 }
 0x291   :  { %v413_v27 = vpop.f32.mrb[1].mxu0 }
 0x292   :  { %v513_v31 = vmul.f32 %v481_v17, %v413_v27  ;;  %v415_v32 = vpop.f32.mrb[2].mxu0  ;;  %v517_v38 = vmul.f32 %v2530_v19, %v413_v27  ;;  %v521_v40 = vmul.f32 %v2532_v21, %v413_v27  ;;  %v525_v46 = vmul.f32 %v2538_v26, %v413_v27 }
 0x293   :  { %v479_v41 = vpack.c.bf16 %v415_v32, %v411_v23  ;;  %v417_v42 = vpop.f32.mrb[3].mxu0 }
 0x294   :  { %v515_v47 = vmul.f32 %v483_v13, %v417_v42  ;;  %v519_v48 = vmul.f32 %v2534_v20, %v417_v42  ;;  %v523_v49 = vmul.f32 %v2536_v22, %v417_v42  ;;  %v1856_v50 = vpop.f32.mrb[0].mxu1  ;;  %v527_v54 = vmul.f32 %v2540_v30, %v417_v42  ;;  %v497_v13 = vld [vmem:[#allocation5 + $0x80] sm:$0xff]  ;;  %v503_v42 = vld [vmem:[#allocation5 + $0xb0] sm:$0xff] }
 0x295   :  { %v2552_v55 = vmul.f32 %v1856_v50, %v498_v24  ;;  %v2554_v56 = vmul.f32 %v1856_v50, %v502_v25  ;;  %v2556_v57 = vmul.f32 %v1856_v50, %v506_v28  ;;  %v2558_v58 = vmul.f32 %v1856_v50, %v510_v29  ;;  %v464_v59 = vpop.f32.mrb[1].mxu1  ;;  %1874 = vmatprep.mubr.bf16.mxu0 %v479_v41  ;;  %v499_v28 = vld [vmem:[#allocation5 + $0x90] sm:$0xff]  ;;  %v501_v41 = vld [vmem:[#allocation5 + $0xa0] sm:$0xff] }
 0x296   :  { %v514_v63 = vmul.f32 %v482_v33, %v464_v59  ;;  %v518_v1 = vmul.f32 %v486_v34, %v464_v59  ;;  %v522_v4 = vmul.f32 %v490_v35, %v464_v59  ;;  %v526_v5 = vmul.f32 %v494_v43, %v464_v59  ;;  %v1857_v6 = vpop.f32.mrb[2].mxu1  ;;  %v505_v43 = vld [vmem:[#allocation5 + $0xc0] sm:$0xff] }
 0x297   :  { %v2560_v7 = vmul.f32 %v1857_v6, %v500_v44  ;;  %v2562_v8 = vmul.f32 %v1857_v6, %v504_v45  ;;  %v2564_v9 = vmul.f32 %v1857_v6, %v508_v51  ;;  %v2566_v10 = vmul.f32 %v1857_v6, %v512_v52  ;;  %v467_v11 = vpop.f32.mrb[3].mxu1  ;;  %v553_v22 = vld [vmem:[#allocation7] sm:$0xff] }
 0x298   :  { %v516_v12 = vmul.f32 %v484_v53, %v467_v11  ;;  %v520_v14 = vmul.f32 %v488_v60, %v467_v11  ;;  %v524_v15 = vmul.f32 %v492_v61, %v467_v11  ;;  %v528_v16 = vmul.f32 %v496_v62, %v467_v11  ;;  %v2568_v17 = vpop.f32.mrb[4].mxu0  ;;  %v1980_v11 = vld [vmem:[#allocation10] sm:$0xff]  }
 0x299   :  { %v545_v18 = vpack.c.bf16 %v515_v47, %v513_v31  ;;  %v423_v23 = vpop.f32.mrb[5].mxu0  ;;  %v546_v24 = vpack.c.bf16 %v519_v48, %v517_v38  ;;  %v547_v25 = vpack.c.bf16 %v523_v49, %v521_v40  ;;  %v548_v27 = vpack.c.bf16 %v527_v54, %v525_v46  ;;  %v507_v46 = vld [vmem:[#allocation5 + $0xd0] sm:$0xff]  ;;  %v509_v47 = vld [vmem:[#allocation5 + $0xe0] sm:$0xff] }
 0x29a   :  { %v2570_v29 = vpop.f32.mrb[6].mxu0  ;;  %v1900_v32 = vpack.c.bf16 %v516_v12, %v514_v63  ;;  %v1904_v33 = vpack.c.bf16 %v520_v14, %v518_v1  ;;  %v1908_v34 = vpack.c.bf16 %v524_v15, %v522_v4  ;;  %v1912_v35 = vpack.c.bf16 %v528_v16, %v526_v5  ;;  %v511_v48 = vld [vmem:[#allocation5 + $0xf0] sm:$0xff] }
 0x29b   :  { %1858 = vmatprep.subr.bf16.mxu0 %v545_v18  ;;  %v480_v44 = vpack.c.bf16 %v2570_v29, %v2568_v17  ;;  %v427_v45 = vpop.f32.mrb[7].mxu0  ;;  %v1916_v31 = vpack.c.bf16 %v2560_v7, %v2552_v55  ;;  %v1920_v38 = vpack.c.bf16 %v2562_v8, %v2554_v56  ;;  %v529_v40 = vmul.f32 %v497_v13, %v423_v23  ;;  %v555_v4 = vld [vmem:[#allocation7 + $0x10] sm:$0xff]  ;;  %v556_v7 = vld [vmem:[#allocation7 + $0x18] sm:$0xff] }
 0x29c   :  { %1859 = vmatpush3.bf16.xpose.msra.mxu0 %v545_v18  ;;  %1901 = vmatpush1.bf16.msra.mxu1 %v1900_v32  ;;  %v531_v49 = vmul.f32 %v499_v28, %v427_v45  ;;  %v1924_v50 = vpack.c.bf16 %v2564_v9, %v2556_v57  ;;  %v1928_v51 = vpack.c.bf16 %v2566_v10, %v2558_v58  ;;  %v2303_v10 = vmov 0.0  }
 0x29d   :  { %1860 = vmatprep.subr.bf16.mxu0 %v546_v24  ;;  %1903 = vmatprep.subr.bf16.mxu1 %v1902_v36  ;;  %v533_v52 = vmul.f32 %v501_v41, %v423_v23  ;;  %v535_v53 = vmul.f32 %v503_v42, %v427_v45  ;;  %v537_v54 = vmul.f32 %v505_v43, %v423_v23 }
 0x29e   :  { %v549_v55 = vpack.c.bf16 %v531_v49, %v529_v40  ;;  %v539_v56 = vmul.f32 %v507_v46, %v427_v45  ;;  %v541_v59 = vmul.f32 %v509_v47, %v423_v23  ;;  %v543_v60 = vmul.f32 %v511_v48, %v427_v45  ;;  %690 = vmatprep.mubr.f32.mxu1 %v2303_v10  ;;  %v1986_v45 = vld [vmem:[#allocation10 + $0x30] sm:$0xff]  }
 0x29f   :  { %v550_v61 = vpack.c.bf16 %v535_v53, %v533_v52  ;;  %v1910_v57 = vpack.c.bf16 %v2540_v30, %v2538_v26  ;;  %v1914_v19 = vpack.c.bf16 %v499_v28, %v497_v13  ;;  %v1918_v20 = vpack.c.bf16 %v503_v42, %v501_v41  ;;  %v1982_v41 = vld [vmem:[#allocation10 + $0x10] sm:$0xff]   ;;  %v1983_v42 = vld [vmem:[#allocation10 + $0x18] sm:$0xff]  }
 0x2a0   :  { %1905 = vmatpush1.bf16.msra.mxu1 %v1904_v33  ;;  %v551_v62 = vpack.c.bf16 %v539_v56, %v537_v54  ;;  %v552_v63 = vpack.c.bf16 %v543_v60, %v541_v59  ;;  %v1922_v36 = vpack.c.bf16 %v507_v46, %v505_v43  ;;  %v1926_v21 = vpack.c.bf16 %v511_v48, %v509_v47  ;;  %v1984_v43 = vld [vmem:[#allocation10 + $0x20] sm:$0xff]  }
 0x2a1   :  { %1907 = vmatprep.subr.bf16.mxu1 %v1906_v37  ;;  %v554_v37 = vld [vmem:[#allocation7 + $0x8] sm:$0xff] }
 0x2a4   :  { %1861 = vmatpush3.bf16.xpose.msra.mxu0 %v546_v24  ;;  %1909 = vmatpush1.bf16.msra.mxu1 %v1908_v34 }
 0x2a5   :  { %1862 = vmatprep.subr.bf16.mxu0 %v547_v25  ;;  %1911 = vmatprep.subr.bf16.mxu1 %v1910_v57  ;;  %v1676_v57 = vld [vmem:[%s2674_s7] ss:$0 sm:$0xff] }
 0x2a8   :  { %1913 = vmatpush1.bf16.msra.mxu1 %v1912_v35  ;;  %v1981_v35 = vld [vmem:[#allocation10 + $0x8] sm:$0xff]  }
 0x2a9   :  { %1915 = vmatprep.subr.bf16.mxu1 %v1914_v19 }
 0x2ac   :  { %1863 = vmatpush3.bf16.xpose.msra.mxu0 %v547_v25  ;;  %1917 = vmatpush1.bf16.msra.mxu1 %v1916_v31  ;;  %v1987_v31 = vld [vmem:[#allocation10 + $0x38] sm:$0xff]  }
 0x2ad   :  { %1864 = vmatprep.subr.bf16.mxu0 %v548_v27  ;;  %1919 = vmatprep.subr.bf16.mxu1 %v1918_v20 }
 0x2b0   :  { %1921 = vmatpush1.bf16.msra.mxu1 %v1920_v38 }
 0x2b1   :  { %1923 = vmatprep.subr.bf16.mxu1 %v1922_v36 }
 0x2b4   :  { %1865 = vmatpush3.bf16.xpose.msra.mxu0 %v548_v27  ;;  %1925 = vmatpush1.bf16.msra.mxu1 %v1924_v50 }
 0x2b5   :  { %1866 = vmatprep.subr.bf16.mxu0 %v549_v55  ;;  %1927 = vmatprep.subr.bf16.mxu1 %v1926_v21 }
 0x2b8   :  { %1929 = vmatpush1.bf16.msra.mxu1 %v1928_v51 }
 0x2b9   :  { %1878 = vmatprep.subr.bf16.mxu1 %v1980_v11 }
 0x2bc   :  { %1867 = vmatpush3.bf16.xpose.msra.mxu0 %v549_v55 }
 0x2bd   :  { %1868 = vmatprep.subr.bf16.mxu0 %v550_v61 }
 0x2c4   :  { %1869 = vmatpush3.bf16.xpose.msra.mxu0 %v550_v61 }
 0x2c5   :  { %1870 = vmatprep.subr.bf16.mxu0 %v551_v62 }
 0x2cc   :  { %1871 = vmatpush3.bf16.xpose.msra.mxu0 %v551_v62 }
 0x2cd   :  { %1872 = vmatprep.subr.bf16.mxu0 %v552_v63 }
 0x2d4   :  { %1873 = vmatpush3.bf16.xpose.msra.mxu0 %v552_v63 }
 0x2db   :  { %1875 = vmatmul.mubr.bf16.vlgmr.msra.gmra.mrb[8].mxu0 %v480_v44  ;;  %v1985_v44 = vld [vmem:[#allocation10 + $0x28] sm:$0xff]  }
 0x2dc   :  { %1163 = vmatprep.mubr.bf16.mxu0 %v2302_v39 }
 0x3ae   :  { %v1876_v26 = vpop.f32.mrb[8].mxu0 }
 0x3af   :  { %v591_v30 = vpop.f32.mrb[9].mxu0  ;;  %v600_v8 = vadd.f32 %v1876_v26, %v555_v4  ;;  %v2100_v4 = vld [vmem:[#allocation2 + $0x10] sm:$0xff] }
 0x3b0   :  { %v592_v58 = vadd.f32 %v591_v30, %v553_v22  ;;  %v1877_v1 = vpop.f32.mrb[10].mxu0 }
 0x3b1   :  { %v594_v5 = vpop.f32.mrb[11].mxu0  ;;  %v603_v9 = vadd.f32 %v1877_v1, %v556_v7  ;;  %v1990_v7 = vld [vmem:[#allocation11 + $0x4] ss:$16 sps:$4 sm:$0xff]  }
 0x3b2   :  { %v595_v6 = vadd.f32 %v594_v5, %v554_v37  ;;  %606 = vmax.xlane.f32.xlu0 %v592_v58  ;;  %1131 = vmatprep.subr.bf16.mxu0 %v1990_v7 }
 0x3b4   :  { %608 = vmax.xlane.f32.xlu1 %v595_v6 }
 0x3b6   :  { %610 = vmax.xlane.f32.xlu0 %v600_v8 }
 0x3b8   :  { %612 = vmax.xlane.f32.xlu1 %v603_v9 }
 0x43f   :  { %v607_v12 = vpop.xlane.xlu0 %606 }
 0x440   :  { %v614_v14 = vsub.f32 %v592_v58, %v607_v12  ;;  %v1997_v12 = vld [vmem:[#allocation11 + $0x28] ss:$16 sps:$4 sm:$0xff]  }
 0x441   :  { %v609_v15 = vpop.xlane.xlu1 %608 }
 0x442   :  { %v618_v16 = vmul.f32 1.442695, %v614_v14  ;;  %v615_v17 = vsub.f32 %v595_v6, %v609_v15 }
 0x443   :  { %v611_v13 = vpop.xlane.xlu0 %610 }
 0x444   :  { %2076 = vpow2.f32 %v618_v16  ;;  %v620_v18 = vmul.f32 1.442695, %v615_v17  ;;  %v616_v23 = vsub.f32 %v600_v8, %v611_v13  ;;  %v1991_v8 = vld [vmem:[#allocation11 + $0x8] ss:$16 sps:$4 sm:$0xff]  }
 0x445   :  { %v613_v24 = vpop.xlane.xlu1 %612 }
 0x446   :  { %2078 = vpow2.f32 %v620_v18  ;;  %v622_v25 = vmul.f32 1.442695, %v616_v23  ;;  %v617_v27 = vsub.f32 %v603_v9, %v613_v24  ;;  %v1993_v9 = vld [vmem:[#allocation11 + $0xc] ss:$16 sps:$4 sm:$0xff]  }
 0x448   :  { %2080 = vpow2.f32 %v622_v25  ;;  %v624_v28 = vmul.f32 1.442695, %v617_v27 }
 0x44a   :  { %2082 = vpow2.f32 %v624_v28 }
 0x44e   :  { %v2077_v29 = vpop.eup %2076 }
 0x44f   :  { %691 = vmatmul.mubr.f32.vlgmr.msra.gmra.mrb[4].mxu1 %v2077_v29 }
 0x450   :  { %696 = vmatprep.mubr.f32.mxu1 %v2303_v10  ;;  %1879 = vmatpush3.bf16.msra.mxu1 %v1980_v11  ;;  %v2079_v32 = vpop.eup %2078  ;;  %v1994_v11 = vld [vmem:[#allocation11 + $0x20] ss:$16 sps:$4 sm:$0xff]  }
 0x451   :  { %1880 = vmatprep.subr.bf16.mxu1 %v1981_v35 }
 0x452   :  { %v2081_v33 = vpop.eup %2080 }
 0x453   :  { %697 = vmatmul.mubr.f32.gmra.mrb[6].mxu1 %v2079_v32 }
 0x454   :  { %702 = vmatprep.mubr.f32.mxu1 %v2303_v10  ;;  %v2083_v34 = vpop.eup %2082  ;;  %1881 = vmatpush3.bf16.msra.mxu1 %v1981_v35  ;;  %v2002_v35 = vld [vmem:[#allocation11 + $0x44] ss:$16 sps:$4 sm:$0xff]  }
 0x455   :  { %1882 = vmatprep.subr.bf16.mxu1 %v1982_v41 }
 0x457   :  { %703 = vmatmul.mubr.f32.gmra.mrb[8].mxu1 %v2081_v33 }
 0x458   :  { %708 = vmatprep.mubr.f32.mxu1 %v2303_v10  ;;  %1883 = vmatpush3.bf16.msra.mxu1 %v1982_v41  ;;  %v1999_v10 = vld [vmem:[#allocation11 + $0x2c] ss:$16 sps:$4 sm:$0xff]  }
 0x459   :  { %1884 = vmatprep.subr.bf16.mxu1 %v1983_v42  ;;  %v2005_v41 = vld [vmem:[#allocation11 + $0x4c] ss:$16 sps:$4 sm:$0xff]  }
 0x45b   :  { %709 = vmatmul.mubr.f32.gmra.mrb[10].mxu1 %v2083_v34 }
 0x45c   :  { %1885 = vmatpush3.bf16.msra.mxu1 %v1983_v42  ;;  %v2000_v42 = vld [vmem:[#allocation11 + $0x40] ss:$16 sps:$4 sm:$0xff]  }
 0x45d   :  { %1886 = vmatprep.subr.bf16.mxu1 %v1984_v43 }
 0x460   :  { %1887 = vmatpush3.bf16.msra.mxu1 %v1984_v43  ;;  %v2003_v43 = vld [vmem:[#allocation11 + $0x48] ss:$16 sps:$4 sm:$0xff]  }
 0x461   :  { %1888 = vmatprep.subr.bf16.mxu1 %v1985_v44 }
 0x464   :  { %1889 = vmatpush3.bf16.msra.mxu1 %v1985_v44  ;;  %v2008_v44 = vld [vmem:[#allocation11 + $0x64] ss:$16 sps:$4 sm:$0xff]  }
 0x465   :  { %1890 = vmatprep.subr.bf16.mxu1 %v1986_v45 }
 0x468   :  { %1891 = vmatpush3.bf16.msra.mxu1 %v1986_v45  ;;  %v2011_v45 = vld [vmem:[#allocation11 + $0x6c] ss:$16 sps:$4 sm:$0xff]  }
 0x469   :  { %1892 = vmatprep.subr.bf16.mxu1 %v1987_v31 }
 0x46c   :  { %1893 = vmatpush3.bf16.msra.mxu1 %v1987_v31  ;;  %v2006_v31 = vld [vmem:[#allocation11 + $0x60] ss:$16 sps:$4 sm:$0xff]  }
 0x46d   :  { %1184 = vmatprep.subr.bf16.mxu1 %v1993_v9 }
 0x522   :  { %v692_v38 = vpop.f32.mrb[4].mxu1 }
 0x523   :  { %v694_v40 = vpop.f32.mrb[5].mxu1 }
 0x524   :  { %2084 = vrcp.f32 %v694_v40  ;;  %v2014_v40 = vld [vmem:[#allocation11 + $0x84] ss:$16 sps:$4 sm:$0xff]  }
 0x526   :  { %v698_v46 = vpop.f32.mrb[6].mxu1 }
 0x527   :  { %v700_v47 = vpop.f32.mrb[7].mxu1 }
 0x528   :  { %2086 = vrcp.f32 %v700_v47  ;;  %v2012_v47 = vld [vmem:[#allocation11 + $0x80] ss:$16 sps:$4 sm:$0xff]  }
 0x52a   :  { %v704_v48 = vpop.f32.mrb[8].mxu1 }
 0x52b   :  { %v706_v49 = vpop.f32.mrb[9].mxu1 }
 0x52c   :  { %2088 = vrcp.f32 %v706_v49  ;;  %v2020_v49 = vld [vmem:[#allocation11 + $0xa4] ss:$16 sps:$4 sm:$0xff]  }
 0x52e   :  { %v2085_v50 = vpop.eup %2084  ;;  %v710_v51 = vpop.f32.mrb[10].mxu1 }
 0x52f   :  { %v712_v52 = vpop.f32.mrb[11].mxu1  ;;  %v719_v53 = vmul.f32 %v2085_v50, %v692_v38  ;;  %v2009_v38 = vld [vmem:[#allocation11 + $0x68] ss:$16 sps:$4 sm:$0xff]   ;;  %v2023_v50 = vld [vmem:[#allocation11 + $0xac] ss:$16 sps:$4 sm:$0xff]  }
 0x530   :  { %2090 = vrcp.f32 %v712_v52  ;;  %v2021_v52 = vld [vmem:[#allocation11 + $0xa8] ss:$16 sps:$4 sm:$0xff]  }
 0x532   :  { %v2087_v54 = vpop.eup %2086 }
 0x533   :  { %v720_v55 = vmul.f32 %v2087_v54, %v698_v46  ;;  %v2017_v46 = vld [vmem:[#allocation11 + $0x8c] ss:$16 sps:$4 sm:$0xff]  }
 0x534   :  { %v2029_v54 = vld [vmem:[#allocation11 + $0xcc] ss:$16 sps:$4 sm:$0xff]  }
 0x535   :  { %v723_v56 = vpack.c.bf16 %v720_v55, %v719_v53  ;;  %v2026_v53 = vld [vmem:[#allocation11 + $0xc4] ss:$16 sps:$4 sm:$0xff]   ;;  %v2024_v55 = vld [vmem:[#allocation11 + $0xc0] ss:$16 sps:$4 sm:$0xff]  }
 0x536   :  { %v2089_v59 = vpop.eup %2088 }
 0x537   :  { %v721_v60 = vmul.f32 %v2089_v59, %v704_v48  ;;  %1894 = vmatprep.mubr.bf16.mxu1 %v723_v56  ;;  %v2015_v48 = vld [vmem:[#allocation11 + $0x88] ss:$16 sps:$4 sm:$0xff]   ;;  %v2032_v59 = vld [vmem:[#allocation11 + $0xe4] ss:$16 sps:$4 sm:$0xff]  }
 0x538   :  { %v2027_v56 = vld [vmem:[#allocation11 + $0xc8] ss:$16 sps:$4 sm:$0xff]  }
 0x53a   :  { %v2091_v61 = vpop.eup %2090 }
 0x53b   :  { %v722_v62 = vmul.f32 %v2091_v61, %v710_v51  ;;  %v2018_v51 = vld [vmem:[#allocation11 + $0xa0] ss:$16 sps:$4 sm:$0xff]  }
 0x53c   :  { %v2030_v61 = vld [vmem:[#allocation11 + $0xe0] ss:$16 sps:$4 sm:$0xff]  }
 0x53d   :  { %v724_v63 = vpack.c.bf16 %v722_v62, %v721_v60  ;;  %v2035_v60 = vld [vmem:[#allocation11 + $0xec] ss:$16 sps:$4 sm:$0xff]   ;;  %v2033_v62 = vld [vmem:[#allocation11 + $0xe8] ss:$16 sps:$4 sm:$0xff]  }
 0x53f   :  { %1895 = vmatmul.mubr.bf16.vlgmr.msra.gmra.mrb[12].mxu1 %v724_v63  ;;  %v2036_v63 = vld [vmem:[#allocation13 + $0x40] sm:$0xff]  }
 0x540   :  { %1216 = vmatprep.mubr.bf16.mxu1 %v2302_v39  ;;  %1185 = vmatpush1.bf16.msra.mxu1 %v1991_v8 }
 0x541   :  { %1186 = vmatprep.subr.bf16.mxu1 %v1999_v10 }
 0x544   :  { %1187 = vmatpush1.bf16.msra.mxu1 %v1997_v12 }
 0x545   :  { %1188 = vmatprep.subr.bf16.mxu1 %v2005_v41 }
 0x548   :  { %1189 = vmatpush1.bf16.msra.mxu1 %v2003_v43  ;;  %v2042_v43 = vld [vmem:[#allocation13 + $0x8] sm:$0xff]  }
 0x549   :  { %1190 = vmatprep.subr.bf16.mxu1 %v2011_v45 }
 0x54c   :  { %1191 = vmatpush1.bf16.msra.mxu1 %v2009_v38  ;;  %v2046_v38 = vld [vmem:[#allocation13 + $0x10] sm:$0xff]  }
 0x54d   :  { %1192 = vmatprep.subr.bf16.mxu1 %v2017_v46  ;;  %v2048_v46 = vld [vmem:[#allocation13 + $0x58] sm:$0xff]  }
 0x550   :  { %1193 = vmatpush1.bf16.msra.mxu1 %v2015_v48  ;;  %v2051_v48 = vld [vmem:[#allocation13 + $0x98] sm:$0xff]  }
 0x551   :  { %1194 = vmatprep.subr.bf16.mxu1 %v2023_v50  ;;  %v2053_v50 = vld [vmem:[#allocation13 + $0xe0] sm:$0xff]  }
 0x554   :  { %1195 = vmatpush1.bf16.msra.mxu1 %v2021_v52  ;;  %v2055_v52 = vld [vmem:[#allocation13 + $0xa0] sm:$0xff]  }
 0x555   :  { %1196 = vmatprep.subr.bf16.mxu1 %v2029_v54  ;;  %v2057_v54 = vld [vmem:[#allocation13 + $0xe8] sm:$0xff]  }
 0x558   :  { %1197 = vmatpush1.bf16.msra.mxu1 %v2027_v56  ;;  %v2059_v56 = vld [vmem:[#allocation13 + $0xa8] sm:$0xff]  }
 0x559   :  { %1198 = vmatprep.subr.bf16.mxu1 %v2035_v60  ;;  %v2061_v60 = vld [vmem:[#allocation13 + $0xf0] sm:$0xff]  }
 0x55c   :  { %1199 = vmatpush1.bf16.msra.mxu1 %v2033_v62  ;;  %v2063_v62 = vld [vmem:[#allocation13 + $0xb0] sm:$0xff]  }
 0x612   :  { %v1896_v19 = vpop.f32.mrb[12].mxu1 }
 0x613   :  { %v830_v20 = vpop.f32.mrb[13].mxu1  ;;  %v839_v26 = vadd.f32 %v1896_v19, %v1676_v57 }
 0x614   :  { %v831_v36 = vadd.f32 %v1676_v57, %v830_v20  ;;  %v1897_v21 = vpop.f32.mrb[14].mxu1 }
 0x615   :  { %v833_v22 = vpop.f32.mrb[15].mxu1  ;;  %v842_v58 = vadd.f32 %v1897_v21, %v1676_v57  ;;  %v2602_v5 = vadd.f32 %v2100_v4, %v839_v26 }
 0x616   :  { %v2596_v30 = vadd.f32 %v831_v36, %v2490_v0  ;;  %v834_v37 = vadd.f32 %v1676_v57, %v833_v22  ;;  %v1988_v0 = vld [vmem:[#allocation11] ss:$16 sps:$4 sm:$0xff]  }
 0x617   :  { %v2606_v6 = vadd.f32 %v842_v58, %v2495_v3  ;;  %1132 = vmatpush1.bf16.msra.mxu0 %v1988_v0  ;;  %v2037_v57 = vld [vmem:[#allocation13 + $0xc0] sm:$0xff]  }
 0x618   :  { %v2599_v1 = vadd.f32 %v834_v37, %v2492_v2  ;;  %851 = vadd.xlane.f32.xlu0 %v2596_v30  ;;  %v1996_v2 = vld [vmem:[#allocation11 + $0x24] ss:$16 sps:$4 sm:$0xff]   ;;  %1810 = vmatprep.subr.bf16.mxu1 %v2037_v57  ;;  %v2065_v57 = vld [vmem:[#allocation13 + $0xf8] sm:$0xff]  }
 0x619   :  { %1133 = vmatprep.subr.bf16.mxu0 %v1996_v2  ;;  %v1685_v2 = vld [vmem:[%s2675_s8] ss:$0 sm:$0xff] }
 0x61a   :  { %853 = vadd.xlane.f32.xlu1 %v2599_v1 }
 0x61b   :  { %1134 = vmatpush1.bf16.msra.mxu0 %v1994_v11 }
 0x61c   :  { %855 = vadd.xlane.f32.xlu0 %v2602_v5  ;;  %1135 = vmatprep.subr.bf16.mxu0 %v2002_v35  ;;  %v2040_v35 = vld [vmem:[#allocation13 + $0x48] sm:$0xff]  }
 0x61e   :  { %857 = vadd.xlane.f32.xlu1 %v2606_v6 }
 0x61f   :  { %1136 = vmatpush1.bf16.msra.mxu0 %v2000_v42 }
 0x620   :  { %1137 = vmatprep.subr.bf16.mxu0 %v2008_v44  ;;  %v2045_v44 = vld [vmem:[#allocation13 + $0xd0] sm:$0xff]  }
 0x623   :  { %1138 = vmatpush1.bf16.msra.mxu0 %v2006_v31 }
 0x624   :  { %1139 = vmatprep.subr.bf16.mxu0 %v2014_v40  ;;  %v2047_v40 = vld [vmem:[#allocation13 + $0x90] sm:$0xff]  }
 0x627   :  { %1140 = vmatpush1.bf16.msra.mxu0 %v2012_v47  ;;  %v2049_v47 = vld [vmem:[#allocation13 + $0xd8] sm:$0xff]  }
 0x628   :  { %1141 = vmatprep.subr.bf16.mxu0 %v2020_v49  ;;  %v2052_v49 = vld [vmem:[#allocation13 + $0x60] sm:$0xff]  }
 0x62b   :  { %1142 = vmatpush1.bf16.msra.mxu0 %v2018_v51  ;;  %v2054_v51 = vld [vmem:[#allocation13 + $0x20] sm:$0xff]  }
 0x62c   :  { %1143 = vmatprep.subr.bf16.mxu0 %v2026_v53  ;;  %v2056_v53 = vld [vmem:[#allocation13 + $0x68] sm:$0xff]  }
 0x62f   :  { %1144 = vmatpush1.bf16.msra.mxu0 %v2024_v55  ;;  %v2058_v55 = vld [vmem:[#allocation13 + $0x28] sm:$0xff]  }
 0x630   :  { %1145 = vmatprep.subr.bf16.mxu0 %v2032_v59  ;;  %v2060_v59 = vld [vmem:[#allocation13 + $0x70] sm:$0xff]  }
 0x633   :  { %1146 = vmatpush1.bf16.msra.mxu0 %v2030_v61  ;;  %v2062_v61 = vld [vmem:[#allocation13 + $0x30] sm:$0xff]  }
 0x634   :  { %1782 = vmatprep.subr.bf16.mxu0 %v2036_v63  ;;  %v2064_v63 = vld [vmem:[#allocation13 + $0x78] sm:$0xff]  }
 0x6a5   :  { %v852_v3 = vpop.xlane.xlu0 %851 }
 0x6a6   :  { %v859_v14 = vmul.f32 0.0078125, %v852_v3 }
 0x6a7   :  { %v854_v15 = vpop.xlane.xlu1 %853 }
 0x6a8   :  { %v2611_v16 = vsub.f32 %v2596_v30, %v859_v14  ;;  %v860_v17 = vmul.f32 0.0078125, %v854_v15  ;;  %v1686_v15 = vld [vmem:[%s2676_s9] ss:$0 sm:$0xff] }
 0x6a9   :  { %v856_v13 = vpop.xlane.xlu0 %855 }
 0x6aa   :  { %v2614_v18 = vsub.f32 %v2599_v1, %v860_v17  ;;  %v861_v23 = vmul.f32 0.0078125, %v856_v13  ;;  %v867_v24 = vmul.f32 %v2611_v16, %v2611_v16 }
 0x6ab   :  { %v858_v25 = vpop.xlane.xlu1 %857 }
 0x6ac   :  { %v2619_v27 = vsub.f32 %v2602_v5, %v861_v23  ;;  %v862_v28 = vmul.f32 0.0078125, %v858_v25  ;;  %871 = vadd.xlane.f32.xlu0 %v867_v24  ;;  %v868_v29 = vmul.f32 %v2614_v18, %v2614_v18 }
 0x6ae   :  { %v2624_v32 = vsub.f32 %v2606_v6, %v862_v28  ;;  %873 = vadd.xlane.f32.xlu1 %v868_v29  ;;  %v869_v33 = vmul.f32 %v2619_v27, %v2619_v27 }
 0x6b0   :  { %875 = vadd.xlane.f32.xlu0 %v869_v33  ;;  %v870_v34 = vmul.f32 %v2624_v32, %v2624_v32 }
 0x6b2   :  { %877 = vadd.xlane.f32.xlu1 %v870_v34  ;;  %v2039_v34 = vld [vmem:[#allocation13 + $0x80] sm:$0xff]  }
 0x739   :  { %v872_v19 = vpop.xlane.xlu0 %871 }
 0x73a   :  { %v879_v20 = vmul.f32 0.0078125, %v872_v19  ;;  %v2066_v19 = vld [vmem:[#allocation13 + $0x38] sm:$0xff]  }
 0x73b   :  { %v874_v36 = vpop.xlane.xlu1 %873 }
 0x73c   :  { %v883_v21 = vadd.f32 1e-05, %v879_v20  ;;  %v880_v22 = vmul.f32 0.0078125, %v874_v36  ;;  %v2067_v20 = vld [vmem:[#allocation13 + $0xb8] sm:$0xff]   ;;  %v951_v36 = vlaneseq }
 0x73d   :  { %v876_v26 = vpop.xlane.xlu0 %875 }
 0x73e   :  { %2092 = vrsqrt.f32 %v883_v21  ;;  %v884_v37 = vadd.f32 1e-05, %v880_v22  ;;  %v881_v58 = vmul.f32 0.0078125, %v876_v26  ;;  %v952_v21 = vshrl.u32 %v951_v36, 7 }
 0x73f   :  { %v878_v4 = vpop.xlane.xlu1 %877 }
 0x740   :  { %2094 = vrsqrt.f32 %v884_v37  ;;  %v885_v0 = vadd.f32 1e-05, %v881_v58  ;;  %v882_v7 = vmul.f32 0.0078125, %v878_v4  ;;  %v953_v22 = vsub.s32 0, %v952_v21  ;;  %v949_v37 = vld [vmem:[%s2678_s11] sm:$0xf] }
 0x741   :  { %v961_v26 = vsub.s32 2, %v952_v21  ;;  %v957_v58 = vsub.s32 1, %v952_v21  ;;  %v965_v4 = vsub.s32 3, %v952_v21 }
 0x742   :  { %2096 = vrsqrt.f32 %v885_v0  ;;  %v886_v8 = vadd.f32 1e-05, %v882_v7  ;;  %v954_v0 = vrot.slane %v949_v37, %v953_v22 }
 0x743   :  { %v962_v7 = vrot.slane %v949_v37, %v961_v26 }
 0x744   :  { %2098 = vrsqrt.f32 %v886_v8  ;;  %v958_v8 = vrot.slane %v949_v37, %v957_v58 }
 0x748   :  { %v2093_v9 = vpop.eup %2092 }
 0x749   :  { %v891_v10 = vmul.f32 %v2093_v9, %v2611_v16  ;;  %v2038_v16 = vld [vmem:[#allocation13] sm:$0xff]   ;;  %v966_v9 = vrot.slane %v949_v37, %v965_v4 }
 0x74a   :  { %v2095_v11 = vpop.eup %2094 }
 0x74b   :  { %v892_v12 = vmul.f32 %v2095_v11, %v2614_v18  ;;  %v901_v3 = vmul.f32 %v1685_v2, %v891_v10  ;;  %v2041_v18 = vld [vmem:[#allocation13 + $0xc8] sm:$0xff]  }
 0x74c   :  { %v2097_v14 = vpop.eup %2096 }
 0x74d   :  { %v902_v17 = vmul.f32 %v1685_v2, %v892_v12  ;;  %v911_v23 = vadd.f32 %v1686_v15, %v901_v3  ;;  %v893_v25 = vmul.f32 %v2097_v14, %v2619_v27  ;;  %v2043_v27 = vld [vmem:[#allocation13 + $0x88] sm:$0xff]  }
 0x74e   :  { %v2099_v13 = vpop.eup %2098 }
 0x74f   :  { %v912_v24 = vadd.f32 %v1686_v15, %v902_v17  ;;  %v894_v28 = vmul.f32 %v2099_v13, %v2624_v32  ;;  %v903_v41 = vmul.f32 %v1685_v2, %v893_v25  ;;  %v2044_v32 = vld [vmem:[#allocation13 + $0x50] sm:$0xff]  }
 0x751   :  { %v915_v29 = vpack.c.bf16 %v912_v24, %v911_v23  ;;  %v904_v33 = vmul.f32 %v1685_v2, %v894_v28  ;;  %v913_v45 = vadd.f32 %v1686_v15, %v903_v41 }
 0x753   :  { %1164 = vmatmul.mubr.bf16.vlgmr.msra.gmra.mrb[12].mxu0 %v915_v29  ;;  %1217 = vmatmul.mubr.bf16.vlgmr.msra.gmra.mrb[16].mxu1 %v915_v29  ;;  %v914_v42 = vadd.f32 %v1686_v15, %v904_v33 }
 0x754   :  { %1173 = vmatprep.mubr.bf16.mxu0 %v2302_v39  ;;  %1226 = vmatprep.mubr.bf16.mxu1 %v2302_v39  ;;  %v2050_v39 = vld [vmem:[#allocation13 + $0x18] sm:$0xff]  }
 0x755   :  { %1783 = vmatpush3.bf16.msra.mxu0 %v2038_v16  ;;  %1811 = vmatpush3.bf16.msra.mxu1 %v2039_v34  ;;  %v916_v31 = vpack.c.bf16 %v914_v42, %v913_v45 }
 0x756   :  { %1784 = vmatprep.subr.bf16.mxu0 %v2040_v35  ;;  %1812 = vmatprep.subr.bf16.mxu1 %v2041_v18 }
 0x759   :  { %1785 = vmatpush3.bf16.msra.mxu0 %v2042_v43  ;;  %1813 = vmatpush3.bf16.msra.mxu1 %v2043_v27 }
 0x75a   :  { %1786 = vmatprep.subr.bf16.mxu0 %v2044_v32  ;;  %1814 = vmatprep.subr.bf16.mxu1 %v2045_v44 }
 0x75b   :  { %1174 = vmatmul.mubr.bf16.gmra.mrb[16].mxu0 %v916_v31  ;;  %1227 = vmatmul.mubr.bf16.gmra.mrb[20].mxu1 %v916_v31 }
 0x75d   :  { %1787 = vmatpush3.bf16.msra.mxu0 %v2046_v38  ;;  %1815 = vmatpush3.bf16.msra.mxu1 %v2047_v40 }
 0x75e   :  { %1788 = vmatprep.subr.bf16.mxu0 %v2048_v46  ;;  %1816 = vmatprep.subr.bf16.mxu1 %v2049_v47 }
 0x761   :  { %1789 = vmatpush3.bf16.msra.mxu0 %v2050_v39  ;;  %1817 = vmatpush3.bf16.msra.mxu1 %v2051_v48 }
 0x762   :  { %1790 = vmatprep.subr.bf16.mxu0 %v2052_v49  ;;  %1818 = vmatprep.subr.bf16.mxu1 %v2053_v50 }
 0x765   :  { %1791 = vmatpush3.bf16.msra.mxu0 %v2054_v51  ;;  %1819 = vmatpush3.bf16.msra.mxu1 %v2055_v52 }
 0x766   :  { %1792 = vmatprep.subr.bf16.mxu0 %v2056_v53  ;;  %1820 = vmatprep.subr.bf16.mxu1 %v2057_v54 }
 0x769   :  { %1793 = vmatpush3.bf16.msra.mxu0 %v2058_v55  ;;  %1821 = vmatpush3.bf16.msra.mxu1 %v2059_v56 }
 0x76a   :  { %1794 = vmatprep.subr.bf16.mxu0 %v2060_v59  ;;  %1822 = vmatprep.subr.bf16.mxu1 %v2061_v60 }
 0x76d   :  { %1795 = vmatpush3.bf16.msra.mxu0 %v2062_v61  ;;  %1823 = vmatpush3.bf16.msra.mxu1 %v2063_v62 }
 0x76e   :  { %1796 = vmatprep.subr.bf16.mxu0 %v2064_v63  ;;  %1824 = vmatprep.subr.bf16.mxu1 %v2065_v57 }
 0x771   :  { %1797 = vmatpush3.bf16.msra.mxu0 %v2066_v19  ;;  %1825 = vmatpush3.bf16.msra.mxu1 %v2067_v20 }
 0x826   :  { %v1165_v2 = vpop.f32.mrb[12].mxu0  ;;  %v1218_v10 = vpop.f32.mrb[16].mxu1 }
 0x827   :  { %v1166_v11 = vadd.f32 %v1165_v2, %v954_v0  ;;  %v1219_v12 = vadd.f32 %v1218_v10, %v962_v7  ;;  %v1167_v3 = vpop.f32.mrb[13].mxu0  ;;  %v1220_v14 = vpop.f32.mrb[17].mxu1 }
 0x828   :  { %v1168_v15 = vadd.f32 %v1167_v3, %v958_v8  ;;  %v1221_v17 = vadd.f32 %v1220_v14, %v966_v9  ;;  %v1169_v13 = vpop.f32.mrb[14].mxu0  ;;  %v1222_v23 = vpop.f32.mrb[18].mxu1 }
 0x829   :  { %v1170_v24 = vadd.f32 %v1169_v13, %v954_v0  ;;  %v1223_v25 = vadd.f32 %v1222_v23, %v962_v7  ;;  %v1171_v28 = vpop.f32.mrb[15].mxu0  ;;  %v1224_v29 = vpop.f32.mrb[19].mxu1  ;;  %v1237_v34 = vmax.f32 %v1166_v11, 0.0  ;;  %v1239_v35 = vmax.f32 %v1219_v12, 0.0 }
 0x82a   :  { %v1172_v33 = vadd.f32 %v1171_v28, %v958_v8  ;;  %v1225_v16 = vadd.f32 %v1224_v29, %v966_v9  ;;  %v1238_v42 = vmax.f32 %v1168_v15, 0.0  ;;  %v1240_v43 = vmax.f32 %v1221_v17, 0.0 }
 0x82b   :  { %v1241_v18 = vmax.f32 %v1170_v24, 0.0  ;;  %v1243_v41 = vmax.f32 %v1223_v25, 0.0 }
 0x82c   :  { %v1242_v27 = vmax.f32 %v1172_v33, 0.0  ;;  %v1244_v32 = vmax.f32 %v1225_v16, 0.0 }
 0x82d   :  { %v1253_v44 = vpack.c.bf16 %v1241_v18, %v1237_v34  ;;  %v1255_v45 = vpack.c.bf16 %v1243_v41, %v1239_v35 }
 0x82e   :  { %v1254_v31 = vpack.c.bf16 %v1242_v27, %v1238_v42  ;;  %v1256_v38 = vpack.c.bf16 %v1244_v32, %v1240_v43  ;;  %v1175_v40 = vpop.f32.mrb[16].mxu0  ;;  %v1228_v46 = vpop.f32.mrb[20].mxu1 }
 0x82f   :  { %v1176_v47 = vadd.f32 %v1175_v40, %v954_v0  ;;  %v1229_v39 = vadd.f32 %v1228_v46, %v962_v7  ;;  %v1177_v48 = vpop.f32.mrb[17].mxu0  ;;  %v1230_v49 = vpop.f32.mrb[21].mxu1 }
 0x830   :  { %v1178_v50 = vadd.f32 %v1177_v48, %v958_v8  ;;  %v1231_v51 = vadd.f32 %v1230_v49, %v966_v9  ;;  %v1179_v52 = vpop.f32.mrb[18].mxu0  ;;  %v1232_v53 = vpop.f32.mrb[22].mxu1  ;;  %1556 = vmatprep.mubr.bf16.mxu0 %v1254_v31  ;;  %1605 = vmatprep.mubr.bf16.mxu1 %v1256_v38 }
 0x831   :  { %v1180_v54 = vadd.f32 %v1179_v52, %v954_v0  ;;  %v1233_v55 = vadd.f32 %v1232_v53, %v962_v7  ;;  %v1181_v56 = vpop.f32.mrb[19].mxu0  ;;  %v1234_v59 = vpop.f32.mrb[23].mxu1  ;;  %1557 = vmatmul.mubr.bf16.vlgmr.msra.gmra.mrb[20].mxu0 %v1253_v44  ;;  %1606 = vmatmul.mubr.bf16.vlgmr.msra.gmra.mrb[24].mxu1 %v1255_v45  ;;  %v1245_v62 = vmax.f32 %v1176_v47, 0.0  ;;  %v1247_v63 = vmax.f32 %v1229_v39, 0.0 }
 0x832   :  { %v1182_v60 = vadd.f32 %v1181_v56, %v958_v8  ;;  %v1235_v61 = vadd.f32 %v1234_v59, %v966_v9  ;;  %v1246_v20 = vmax.f32 %v1178_v50, 0.0  ;;  %v1248_v36 = vmax.f32 %v1231_v51, 0.0  ;;  %v1719_v8 = vld [vmem:[%s2680_s13] ss:$0 sm:$0xff]  ;;  %s2304_s13 = smov [#allocation14]  }
 0x833   :  { %v1249_v57 = vmax.f32 %v1180_v54, 0.0  ;;  %v1251_v19 = vmax.f32 %v1233_v55, 0.0  ;;  %s1635_s25 = sshll.u32 %s2304_s13, 4  ;;  %s1636_s25 = int_to_ptr.vmem [resolvable:$true] %s1635_s25 }
 0x834   :  { %v1250_v21 = vmax.f32 %v1182_v60, 0.0  ;;  %v1252_v22 = vmax.f32 %v1235_v61, 0.0  ;;  %s2255_s23 = scalar_lea.vmem %s1636_s25, 512  ;;  %p2260_p1 = scmp.lt.s32.totalorder %s1636_s25, %s1636_s25 }
 0x835   :  { %v1257_v26 = vpack.c.bf16 %v1249_v57, %v1245_v62  ;;  %v1259_v37 = vpack.c.bf16 %v1251_v19, %v1247_v63  ;;  %p2256_p0 = scmp.ne.s32.totalorder %s1636_s25, %s2255_s23  ;;  %p2261_p2 = scmp.lt.s32.totalorder %s2255_s23, %s2255_s23 }
 0x836   :  { %v1258_v58 = vpack.c.bf16 %v1250_v21, %v1246_v20  ;;  %v1260_v4 = vpack.c.bf16 %v1252_v22, %v1248_v36 }
 0x837   :  { %p2262_p3 = por %p2261_p2, %p2260_p1 }
 0x838   :  { %1564 = vmatprep.mubr.bf16.mxu0 %v1258_v58  ;;  %1613 = vmatprep.mubr.bf16.mxu1 %v1260_v4 }
 0x839   :  { %1565 = vmatmul.mubr.bf16.gmra.mrb[24].mxu0 %v1257_v26  ;;  %1614 = vmatmul.mubr.bf16.gmra.mrb[28].mxu1 %v1259_v37  ;;  %p2263_p4 = pnand %p2262_p3, %p2256_p0 }
 0x904   :  { %v1798_v0 = vpop.f32.mrb[20].mxu0  ;;  %v1826_v7 = vpop.f32.mrb[24].mxu1 }
 0x905   :  { %v1799_v9 = vpop.f32.mrb[21].mxu0  ;;  %v1827_v2 = vpop.f32.mrb[25].mxu1 }
 0x906   :  { %v1800_v10 = vadd.f32 %v1799_v9, %v1798_v0  ;;  %v1828_v11 = vadd.f32 %v1827_v2, %v1826_v7  ;;  %v1801_v12 = vpop.f32.mrb[22].mxu0  ;;  %v1829_v3 = vpop.f32.mrb[26].mxu1 }
 0x907   :  { %v1802_v14 = vpop.f32.mrb[23].mxu0  ;;  %v1830_v15 = vpop.f32.mrb[27].mxu1 }
 0x908   :  { %v1559_v17 = vadd.f32 %v1800_v10, %v1719_v8  ;;  %v1803_v13 = vadd.f32 %v1802_v14, %v1801_v12  ;;  %v1831_v23 = vadd.f32 %v1830_v15, %v1829_v3 }
 0x90a   :  { %v1608_v24 = vadd.f32 %v1828_v11, %v1559_v17  ;;  %v1562_v25 = vadd.f32 %v1803_v13, %v1719_v8 }
 0x90c   :  { %v1622_v28 = vadd.f32 %v1608_v24, %v2596_v30  ;;  %v1611_v29 = vadd.f32 %v1831_v23, %v1562_v25  ;;  %v1804_v33 = vpop.f32.mrb[24].mxu0  ;;  %v1832_v16 = vpop.f32.mrb[28].mxu1 }
 0x90d   :  { %v1805_v34 = vpop.f32.mrb[25].mxu0  ;;  %v1833_v35 = vpop.f32.mrb[29].mxu1 }
 0x90e   :  { %1626 = vst [vmem:[#allocation14] sm:$0xff] %v1622_v28  ;;  %v1623_v18 = vadd.f32 %v1611_v29, %v2599_v1  ;;  %v1806_v41 = vadd.f32 %v1805_v34, %v1804_v33  ;;  %v1834_v42 = vadd.f32 %v1833_v35, %v1832_v16  ;;  %v1807_v43 = vpop.f32.mrb[26].mxu0  ;;  %v1835_v27 = vpop.f32.mrb[30].mxu1 }
 0x90f   :  { %v1808_v32 = vpop.f32.mrb[27].mxu0  ;;  %v1836_v44 = vpop.f32.mrb[31].mxu1 }
 0x910   :  { %1627 = vst [vmem:[#allocation14 + $0x8] sm:$0xff] %v1623_v18  ;;  %v1567_v45 = vadd.f32 %v1806_v41, %v1719_v8  ;;  %v1809_v31 = vadd.f32 %v1808_v32, %v1807_v43  ;;  %v1837_v38 = vadd.f32 %v1836_v44, %v1835_v27 }
 0x912   :  { %v1616_v40 = vadd.f32 %v1834_v42, %v1567_v45  ;;  %v1570_v30 = vadd.f32 %v1809_v31, %v1719_v8 }
 0x914   :  { %v1624_v46 = vadd.f32 %v1616_v40, %v2602_v5  ;;  %v1619_v47 = vadd.f32 %v1837_v38, %v1570_v30 }
 0x916   :  { %1628 = vst [vmem:[#allocation14 + $0x10] sm:$0xff] %v1624_v46  ;;  %v1625_v1 = vadd.f32 %v1619_v47, %v2606_v6 }
 0x918   :  { %1629 = vst [vmem:[#allocation14 + $0x18] sm:$0xff] %v1625_v1 }
 0x919   :  { %2266 = shalt.err (!%p2263_p4)
}
 0x91a   :  { %s2267_s0 = scalar_lea.hbm %s2681_s14, 512 }
 0x91b   :  { %p2268_p5 = scmp.ne.s32.totalorder %s2681_s14, %s2267_s0  ;;  %p2271_p6 = scmp.lt.u32.totalorder %s2267_s0, %s2681_s14 }
 0x91d   :  { %p2273_p7 = pnand %p2271_p6, %p2268_p5 }
 0x91f   :  { %2276 = shalt.err (!%p2273_p7)
}
 0x920   :  { %1641 = dma.vmem_to_hbm [thread:$0]  %s1636_s25, 512, %s2681_s14, [#allocation4], %s2295_s10, %s2295_s10, %s2296_s24  }
 0x921   :  { %2285 = dma.done.wait [#allocation4], 512  }
 0x922   :  { %2286 = vsyncadd [#allocation4], 4294966784 }
 0x923   :  { %1645 = vsyncpa [#allocation3], 1 }
 0x924   :  { %1646 = vsyncpa [#allocation6], 1 }
 0x925   :  { %1647 = vsyncpa [#allocation9], 1 }
 0x926   :  { %1648 = vsyncpa [#allocation12], 1 }
 0x927   :  { %1649 = vsyncpa [#allocation4], 1 }

</bundles_post_ra>
